<compile_context>
chip_gen: v7x
topology: tpu7x:2x2x1
jax: 0.10.0
libtpu: 0.0.40
codegen_flags: <defaults>
</compile_context>

<pallas_src>
import functools

import jax
import jax.numpy as jnp
import numpy as np
from jax.experimental import pallas as pl
from jax.experimental.pallas import tpu as pltpu


# ----------------------------- Pallas kernel --------------------------------

def _layernorm(x, w, b, eps=1e-5):
    mu = jnp.mean(x, axis=-1, keepdims=True)
    var = jnp.mean((x - mu) ** 2, axis=-1, keepdims=True)
    return (x - mu) * jax.lax.rsqrt(var + eps) * w + b


def _encoder_block_kernel(x_ref,
                          wqkv_ref, bqkv_ref, wo_ref, bo_ref,
                          ln1w_ref, ln1b_ref,
                          w1_ref, b1_ref, w2_ref, b2_ref,
                          ln2w_ref, ln2b_ref,
                          out_ref, *, n_heads):
    """One EBlock for one batch block; layers are the inner ('arbitrary') axis."""
    f32 = jnp.float32
    bf16 = jnp.bfloat16
    layer = pl.program_id(1)

    Bb, T, D = out_ref.shape
    H = n_heads
    dh = D // H
    M = Bb * T

    # Layer 0: seed the VMEM-resident activation.  out_ref's block index is
    # constant along the layer axis, so it stays in VMEM across layers and is
    # only written back to HBM when the batch block changes.
    @pl.when(layer == 0)
    def _():
        out_ref[...] = x_ref[...]

    x = out_ref[...].reshape(M, D)                 # (M, D) f32 (leading collapse)
    xb = x.astype(bf16)

    # ---- fused QKV projection: ONE (M,D)@(D,3D) matmul on the MXU ----------
    # 1/sqrt(dh) is pre-folded into the Q columns of wqkv/bqkv at pack time.
    qkv = jnp.dot(xb, wqkv_ref[...],
                  preferred_element_type=f32) + bqkv_ref[...]        # (M, 3D)

    # ---- multi-head attention (heads batched on the MXU) -------------------
    attn_rows = []
    for b in range(Bb):                            # static, small batch block
        rows = qkv[b * T:(b + 1) * T]              # (T, 3D)
        q = jnp.stack([rows[:, h * dh:(h + 1) * dh]
                       for h in range(H)], axis=0)                    # (H,T,dh)
        k = jnp.stack([rows[:, D + h * dh:D + (h + 1) * dh]
                       for h in range(H)], axis=0)
        v = jnp.stack([rows[:, 2 * D + h * dh:2 * D + (h + 1) * dh]
                       for h in range(H)], axis=0)
        s = jnp.einsum("hqd,hkd->hqk", q.astype(bf16), k.astype(bf16),
                       preferred_element_type=f32)                    # (H,T,T)
        s = s - jnp.max(s, axis=-1, keepdims=True)
        p = jnp.exp(s)
        p = p * pl.reciprocal(jnp.sum(p, axis=-1, keepdims=True), approx=True)
        ctx = jnp.einsum("hqk,hkd->hqd", p.astype(bf16), v.astype(bf16),
                         preferred_element_type=f32)                  # (H,T,dh)
        # head re-concat back to (T, D): pure lane-axis data movement (XLU).
        attn_rows.append(jnp.concatenate([ctx[h] for h in range(H)], axis=-1))
    ctx_all = attn_rows[0] if Bb == 1 else jnp.concatenate(attn_rows, axis=0)

    # ---- output projection: single full-K (M,D)@(D,D) matmul ----------------
    attn_out = jnp.dot(ctx_all.astype(bf16), wo_ref[...],
                       preferred_element_type=f32) + bo_ref[...]      # (M, D)

    # drop1: identity (eval mode)
    x1 = _layernorm(x + attn_out, ln1w_ref[...], ln1b_ref[...])

    # ---- feed-forward --------------------------------------------------------
    ff = jnp.dot(x1.astype(bf16), w1_ref[...],
                 preferred_element_type=f32) + b1_ref[...]
    ff = jnp.maximum(ff, 0.0)
    ff = jnp.dot(ff.astype(bf16), w2_ref[...],
                 preferred_element_type=f32) + b2_ref[...]
    # ff dropout (p=0.2): identity (eval mode)

    y = _layernorm(x1 + ff, ln2w_ref[...], ln2b_ref[...])
    out_ref[...] = y.reshape(Bb, T, D).astype(out_ref.dtype)   # resident for layer+1


_STACKED_NAMES = ("wqkv", "bqkv", "wo", "bo", "ln1w", "ln1b",
                  "w1", "b1", "w2", "b2", "ln2w", "ln2b")


def _weight_spec(w):
    """Full-array block per layer: block index = (layer, 0, 0, ...)."""
    zeros = (0,) * (w.ndim - 1)
    return pl.BlockSpec((None,) + w.shape[1:], lambda b, l, _z=zeros: (l,) + _z)


def _choose_batch_block(B, T):
    """Largest divisor of B with B_blk*T <= 256, keeping >=2 parallel blocks
    when possible (feeds both TensorCores on v7x)."""
    bb = 1
    for cand in range(1, B + 1):
        if B % cand == 0 and cand * T <= 256:
            bb = cand
    while bb > 1 and B // bb < 2:
        cand = bb - 1
        while cand > 1 and B % cand != 0:
            cand -= 1
        bb = cand
    return bb


def _pick_vmem_limit_bytes():
    """~75% of physical VMEM: ~96 MiB on v5e/v6e (128 MiB), ~48 MiB on v7x (64 MiB)."""
    try:
        info = pltpu.get_tpu_info()
        cap = int(getattr(info, "vmem_capacity_bytes", 0)) or (128 << 20)
    except Exception:
        cap = 128 << 20
    return int(min(cap - cap // 4, 100 << 20))


def encoder_stack_pallas(x, stacked, n_heads, batch_block=None):
    """Run the full EBlock stack on x: (B, T, D) f32 -> (B, T, D) f32."""
    B, T, D = x.shape
    L = stacked["wqkv"].shape[0]
    Bb = batch_block if batch_block is not None else _choose_batch_block(B, T)
    assert B % Bb == 0, "batch block must divide batch size"
    weights = [stacked[n] for n in _STACKED_NAMES]

    in_specs = [pl.BlockSpec((Bb, T, D), lambda b, l: (b, 0, 0))]
    in_specs += [_weight_spec(w) for w in weights]
    out_spec = pl.BlockSpec((Bb, T, D), lambda b, l: (b, 0, 0))

    kernel = functools.partial(_encoder_block_kernel, n_heads=n_heads)
    return pl.pallas_call(
        kernel,
        out_shape=jax.ShapeDtypeStruct((B, T, D), jnp.float32),
        grid_spec=pltpu.PrefetchScalarGridSpec(
            num_scalar_prefetch=0,
            grid=(B // Bb, L),
            in_specs=in_specs,
            out_specs=out_spec),
        compiler_params=pltpu.CompilerParams(
            dimension_semantics=("parallel", "arbitrary"),
            vmem_limit_bytes=_pick_vmem_limit_bytes()),
    )(x, *weights)


# ----------------------- Wrapper-side weight packing --------------------------

def prepare_encoder_params(layer_params, n_heads, mxu_dtype=jnp.bfloat16):
    """Pack per-layer weights: fuse QKV into (D, 3D) (scale folded into Q),
    keep wo as (D, D), stack all layers on a leading axis."""
    per_layer = []
    for p in layer_params:
        D = p["wq"].shape[0]
        dh = D // n_heads
        scale = 1.0 / float(np.sqrt(dh))
        wqkv = jnp.concatenate([p["wq"] * scale, p["wk"], p["wv"]], axis=-1)  # (D,3D)
        bqkv = jnp.concatenate([p["bq"] * scale, p["bk"], p["bv"]], axis=-1)  # (1,3D)
        per_layer.append(dict(
            wqkv=wqkv.astype(mxu_dtype),
            bqkv=bqkv.astype(jnp.float32),
            wo=p["wo"].astype(mxu_dtype),
            bo=p["bo"].astype(jnp.float32),
            ln1w=p["ln1w"].astype(jnp.float32),
            ln1b=p["ln1b"].astype(jnp.float32),
            w1=p["w1"].astype(mxu_dtype),
            b1=p["b1"].astype(jnp.float32),
            w2=p["w2"].astype(mxu_dtype),
            b2=p["b2"].astype(jnp.float32),
            ln2w=p["ln2w"].astype(jnp.float32),
            ln2b=p["ln2b"].astype(jnp.float32)))
    return {k: jnp.stack([lp[k] for lp in per_layer], axis=0)
            for k in per_layer[0]}


# ----------------------------- Encoder wrapper -------------------------------

def encoder_forward(input_ids, embed_table, pos_table, stacked_params, n_heads,
                    batch_block=None):
    """Encoder.forward: embeddings (glue) + fused Pallas EBlock stack."""
    B, T = input_ids.shape
    tok_emb = embed_table[input_ids]                    # (B, T, D) gather
    pos_emb = pos_table[:T][None, :, :]                 # (1, T, D)
    x = (tok_emb + pos_emb).astype(jnp.float32)
    # self.drop: identity (eval mode)
    return encoder_stack_pallas(x, stacked_params, n_heads, batch_block)


# ----------------------------- Reference (pure JAX) --------------------------

def _eblock_ref(x, p, n_heads):
    T, D = x.shape[-2:]
    dh = D // n_heads
    hp = jax.lax.Precision.HIGHEST

    def mm(a, b):
        return jnp.dot(a, b, precision=hp)

    q = mm(x, p["wq"]) + p["bq"]
    k = mm(x, p["wk"]) + p["bk"]
    v = mm(x, p["wv"]) + p["bv"]
    outs = []
    for h in range(n_heads):
        qh = q[..., h * dh:(h + 1) * dh]
        kh = k[..., h * dh:(h + 1) * dh]
        vh = v[..., h * dh:(h + 1) * dh]
        s = jnp.einsum("btd,bsd->bts", qh, kh, precision=hp) / np.sqrt(dh)
        pmat = jax.nn.softmax(s, axis=-1)
        outs.append(jnp.einsum("bts,bsd->btd", pmat, vh, precision=hp))
    attn = jnp.concatenate(outs, axis=-1)
    h_out = mm(attn, p["wo"]) + p["bo"]

    def ln(z, w, b):
        mu = jnp.mean(z, -1, keepdims=True)
        var = jnp.mean((z - mu) ** 2, -1, keepdims=True)
        return (z - mu) * jax.lax.rsqrt(var + 1e-5) * w + b

    x1 = ln(x + h_out, p["ln1w"], p["ln1b"])
    ff = jnp.maximum(mm(x1, p["w1"]) + p["b1"], 0.0)
    ff = mm(ff, p["w2"]) + p["b2"]
    return ln(x1 + ff, p["ln2w"], p["ln2b"])


def encoder_ref(input_ids, embed_table, pos_table, layer_params, n_heads):
    T = input_ids.shape[1]
    x = (embed_table[input_ids] + pos_table[:T][None]).astype(jnp.float32)
    for p in layer_params:
        x = _eblock_ref(x, p, n_heads)
    return x


# ----------------------------- Setup & main -----------------------------------

def make_params(key, dim, n_heads, n_layers, vocab_size, block_size):
    keys = jax.random.split(key, 2 + n_layers)
    embed_table = 0.02 * jax.random.normal(keys[0], (vocab_size, dim), jnp.float32)
    pos_table = 0.02 * jax.random.normal(keys[1], (block_size, dim), jnp.float32)

    layer_params = []
    for li in range(n_layers):
        lk = jax.random.split(keys[2 + li], 8)
        s = 0.05
        p = {
            "wq": s * jax.random.normal(lk[0], (dim, dim), jnp.float32),
            "bq": jnp.zeros((1, dim), jnp.float32),
            "wk": s * jax.random.normal(lk[1], (dim, dim), jnp.float32),
            "bk": jnp.zeros((1, dim), jnp.float32),
            "wv": s * jax.random.normal(lk[2], (dim, dim), jnp.float32),
            "bv": jnp.zeros((1, dim), jnp.float32),
            "wo": s * jax.random.normal(lk[3], (dim, dim), jnp.float32),
            "bo": jnp.zeros((1, dim), jnp.float32),
            "ln1w": jnp.ones((1, dim), jnp.float32),
            "ln1b": jnp.zeros((1, dim), jnp.float32),
            "w1": s * jax.random.normal(lk[4], (dim, 4 * dim), jnp.float32),
            "b1": 0.01 * jax.random.normal(lk[5], (1, 4 * dim), jnp.float32),
            "w2": s * jax.random.normal(lk[6], (4 * dim, dim), jnp.float32),
            "b2": 0.01 * jax.random.normal(lk[7], (1, dim), jnp.float32),
            "ln2w": jnp.ones((1, dim), jnp.float32),
            "ln2b": jnp.zeros((1, dim), jnp.float32),
        }
        layer_params.append(p)
    return embed_table, pos_table, layer_params


if __name__ == "__main__":
    # Small config consistent with Encoder.__init__
    B, T = 4, 8
    dim, n_heads, n_layers = 32, 4, 2
    vocab_size, block_size = 50, 16

    key = jax.random.PRNGKey(0)
    pkey, ikey = jax.random.split(key)
    embed_table, pos_table, layer_params = make_params(
        pkey, dim, n_heads, n_layers, vocab_size, block_size)
    stacked = prepare_encoder_params(layer_params, n_heads)

    input_ids = jax.random.randint(ikey, (B, T), 0, vocab_size, dtype=jnp.int32)

    out = encoder_forward(input_ids, embed_table, pos_table, stacked, n_heads)
    out = jax.block_until_ready(out)

    # Reference is f32 / HIGHEST precision; kernel uses bf16 MXU operands with
    # f32 accumulation, so compare with a bf16-appropriate tolerance.
    ref = encoder_ref(input_ids, embed_table, pos_table, layer_params, n_heads)
    np.testing.assert_allclose(np.asarray(out), np.asarray(ref),
                               rtol=2e-2, atol=2e-2)

    print("KERNEL_OK")
</pallas_src>

<mosaic_0001>
module attributes {stable_mosaic.version = 11 : i64} {
  func.func @_encoder_block_kernel(%arg0: i32, %arg1: i32, %arg2: memref<2x8x32xf32, #tpu.memory_space<vmem>>, %arg3: memref<1x32x96xbf16, #tpu.memory_space<vmem>>, %arg4: memref<1x1x96xf32, #tpu.memory_space<vmem>>, %arg5: memref<1x32x32xbf16, #tpu.memory_space<vmem>>, %arg6: memref<1x1x32xf32, #tpu.memory_space<vmem>>, %arg7: memref<1x1x32xf32, #tpu.memory_space<vmem>>, %arg8: memref<1x1x32xf32, #tpu.memory_space<vmem>>, %arg9: memref<1x32x128xbf16, #tpu.memory_space<vmem>>, %arg10: memref<1x1x128xf32, #tpu.memory_space<vmem>>, %arg11: memref<1x128x32xbf16, #tpu.memory_space<vmem>>, %arg12: memref<1x1x32xf32, #tpu.memory_space<vmem>>, %arg13: memref<1x1x32xf32, #tpu.memory_space<vmem>>, %arg14: memref<1x1x32xf32, #tpu.memory_space<vmem>>, %arg15: memref<2x8x32xf32, #tpu.memory_space<vmem>>) attributes {dimension_semantics = [#tpu.dimension_semantics<parallel>, #tpu.dimension_semantics<arbitrary>], iteration_bounds = array<i64: 2, 2>, scalar_prefetch = 0 : i64, scratch_operands = 0 : i64, tpu.core_type = #tpu.core_type<tc>, window_params = [{transform_indices = @transform_0, window_bounds = array<i64: 2, 8, 32>}, {transform_indices = @transform_1, window_bounds = array<i64: 1, 32, 96>}, {transform_indices = @transform_2, window_bounds = array<i64: 1, 1, 96>}, {transform_indices = @transform_3, window_bounds = array<i64: 1, 32, 32>}, {transform_indices = @transform_4, window_bounds = array<i64: 1, 1, 32>}, {transform_indices = @transform_5, window_bounds = array<i64: 1, 1, 32>}, {transform_indices = @transform_6, window_bounds = array<i64: 1, 1, 32>}, {transform_indices = @transform_7, window_bounds = array<i64: 1, 32, 128>}, {transform_indices = @transform_8, window_bounds = array<i64: 1, 1, 128>}, {transform_indices = @transform_9, window_bounds = array<i64: 1, 128, 32>}, {transform_indices = @transform_10, window_bounds = array<i64: 1, 1, 32>}, {transform_indices = @transform_11, window_bounds = array<i64: 1, 1, 32>}, {transform_indices = @transform_12, window_bounds = array<i64: 1, 1, 32>}, {transform_indices = @transform_13, window_bounds = array<i64: 2, 8, 32>}]} {
    %c0_i32 = arith.constant 0 : i32
    %0 = arith.cmpi eq, %arg1, %c0_i32 : i32
    %1 = arith.extui %0 : i1 to i32
    %c0_i32_0 = arith.constant 0 : i32
    %2 = arith.cmpi ne, %1, %c0_i32_0 : i32
    scf.if %2 {
      %c0_64 = arith.constant 0 : index
      %c0_65 = arith.constant 0 : index
      %c0_66 = arith.constant 0 : index
      %202 = vector.load %arg2[%c0_64, %c0_65, %c0_66] : memref<2x8x32xf32, #tpu.memory_space<vmem>>, vector<2x8x32xf32>
      %c0_67 = arith.constant 0 : index
      %c0_68 = arith.constant 0 : index
      %c0_69 = arith.constant 0 : index
      %203 = vector.load %arg15[%c0_67, %c0_68, %c0_69] : memref<2x8x32xf32, #tpu.memory_space<vmem>>, vector<2x8x32xf32>
      tpu.vector_store %arg15[%c0_67, %c0_68, %c0_69], %202 {strides = array<i32>} : memref<2x8x32xf32, #tpu.memory_space<vmem>>, vector<2x8x32xf32>,
    } else {
    }
    %c0 = arith.constant 0 : index
    %c0_1 = arith.constant 0 : index
    %c0_2 = arith.constant 0 : index
    %3 = vector.load %arg15[%c0, %c0_1, %c0_2] : memref<2x8x32xf32, #tpu.memory_space<vmem>>, vector<2x8x32xf32>
    %4 = vector.shape_cast %3 : vector<2x8x32xf32> to vector<16x32xf32>
    %5 = arith.truncf %4 : vector<16x32xf32> to vector<16x32xbf16>
    %c0_3 = arith.constant 0 : index
    %c0_4 = arith.constant 0 : index
    %c0_5 = arith.constant 0 : index
    %6 = vector.load %arg3[%c0_3, %c0_4, %c0_5] : memref<1x32x96xbf16, #tpu.memory_space<vmem>>, vector<1x32x96xbf16>
    %7 = vector.shape_cast %6 : vector<1x32x96xbf16> to vector<32x96xbf16>
    %cst = arith.constant dense<0.000000e+00> : vector<16x96xf32>
    %8 = tpu.matmul %5, %7, %cst {dimension_numbers = #tpu.dot_dimension_numbers<[1], [0], [0], [1], [0, 0, 1, 1], [], []>} : vector<16x32xbf16>, vector<32x96xbf16>, vector<16x96xf32> -> vector<16x96xf32>
    %c0_6 = arith.constant 0 : index
    %c0_7 = arith.constant 0 : index
    %c0_8 = arith.constant 0 : index
    %9 = vector.load %arg4[%c0_6, %c0_7, %c0_8] : memref<1x1x96xf32, #tpu.memory_space<vmem>>, vector<1x1x96xf32>
    %10 = vector.shape_cast %9 : vector<1x1x96xf32> to vector<1x96xf32>
    %11 = vector.broadcast %10 : vector<1x96xf32> to vector<16x96xf32>
    %12 = arith.addf %8, %11 : vector<16x96xf32>
    %13 = vector.extract_strided_slice %12 {offsets = [0, 0], sizes = [8, 96], strides = [1, 1]} : vector<16x96xf32> to vector<8x96xf32>
    %14 = vector.extract_strided_slice %13 {offsets = [0, 0], sizes = [8, 8], strides = [1, 1]} : vector<8x96xf32> to vector<8x8xf32>
    %15 = vector.extract_strided_slice %13 {offsets = [0, 8], sizes = [8, 8], strides = [1, 1]} : vector<8x96xf32> to vector<8x8xf32>
    %16 = vector.extract_strided_slice %13 {offsets = [0, 16], sizes = [8, 8], strides = [1, 1]} : vector<8x96xf32> to vector<8x8xf32>
    %17 = vector.extract_strided_slice %13 {offsets = [0, 24], sizes = [8, 8], strides = [1, 1]} : vector<8x96xf32> to vector<8x8xf32>
    %18 = vector.shape_cast %14 : vector<8x8xf32> to vector<1x8x8xf32>
    %19 = vector.shape_cast %15 : vector<8x8xf32> to vector<1x8x8xf32>
    %20 = vector.shape_cast %16 : vector<8x8xf32> to vector<1x8x8xf32>
    %21 = vector.shape_cast %17 : vector<8x8xf32> to vector<1x8x8xf32>
    %22 = tpu.concatenate %18, %19, %20, %21 in 0 : vector<1x8x8xf32>, vector<1x8x8xf32>, vector<1x8x8xf32>, vector<1x8x8xf32> -> vector<4x8x8xf32>
    %23 = vector.extract_strided_slice %13 {offsets = [0, 32], sizes = [8, 8], strides = [1, 1]} : vector<8x96xf32> to vector<8x8xf32>
    %24 = vector.extract_strided_slice %13 {offsets = [0, 40], sizes = [8, 8], strides = [1, 1]} : vector<8x96xf32> to vector<8x8xf32>
    %25 = vector.extract_strided_slice %13 {offsets = [0, 48], sizes = [8, 8], strides = [1, 1]} : vector<8x96xf32> to vector<8x8xf32>
    %26 = vector.extract_strided_slice %13 {offsets = [0, 56], sizes = [8, 8], strides = [1, 1]} : vector<8x96xf32> to vector<8x8xf32>
    %27 = vector.shape_cast %23 : vector<8x8xf32> to vector<1x8x8xf32>
    %28 = vector.shape_cast %24 : vector<8x8xf32> to vector<1x8x8xf32>
    %29 = vector.shape_cast %25 : vector<8x8xf32> to vector<1x8x8xf32>
    %30 = vector.shape_cast %26 : vector<8x8xf32> to vector<1x8x8xf32>
    %31 = tpu.concatenate %27, %28, %29, %30 in 0 : vector<1x8x8xf32>, vector<1x8x8xf32>, vector<1x8x8xf32>, vector<1x8x8xf32> -> vector<4x8x8xf32>
    %32 = vector.extract_strided_slice %13 {offsets = [0, 64], sizes = [8, 8], strides = [1, 1]} : vector<8x96xf32> to vector<8x8xf32>
    %33 = vector.extract_strided_slice %13 {offsets = [0, 72], sizes = [8, 8], strides = [1, 1]} : vector<8x96xf32> to vector<8x8xf32>
    %34 = vector.extract_strided_slice %13 {offsets = [0, 80], sizes = [8, 8], strides = [1, 1]} : vector<8x96xf32> to vector<8x8xf32>
    %35 = vector.extract_strided_slice %13 {offsets = [0, 88], sizes = [8, 8], strides = [1, 1]} : vector<8x96xf32> to vector<8x8xf32>
    %36 = vector.shape_cast %32 : vector<8x8xf32> to vector<1x8x8xf32>
    %37 = vector.shape_cast %33 : vector<8x8xf32> to vector<1x8x8xf32>
    %38 = vector.shape_cast %34 : vector<8x8xf32> to vector<1x8x8xf32>
    %39 = vector.shape_cast %35 : vector<8x8xf32> to vector<1x8x8xf32>
    %40 = tpu.concatenate %36, %37, %38, %39 in 0 : vector<1x8x8xf32>, vector<1x8x8xf32>, vector<1x8x8xf32>, vector<1x8x8xf32> -> vector<4x8x8xf32>
    %41 = arith.truncf %22 : vector<4x8x8xf32> to vector<4x8x8xbf16>
    %42 = arith.truncf %31 : vector<4x8x8xf32> to vector<4x8x8xbf16>
    "tpu.trace_start"() <{level = 10 : i32, message = "hqd,hkd->hqk"}> : () -> ()
    %cst_9 = arith.constant dense<0.000000e+00> : vector<4x8x8xf32>
    %43 = tpu.matmul %41, %42, %cst_9 {dimension_numbers = #tpu.dot_dimension_numbers<[2], [2], [1], [1], [0, 0, 0, 1, 1, 1], [0], [0]>} : vector<4x8x8xbf16>, vector<4x8x8xbf16>, vector<4x8x8xf32> -> vector<4x8x8xf32>
    "tpu.trace_stop"() : () -> ()
    %cst_10 = arith.constant dense<0xFF800000> : vector<4x8xf32>
    %44 = vector.multi_reduction <maximumf>, %43, %cst_10 [2] : vector<4x8x8xf32> to vector<4x8xf32>
    %45 = vector.shape_cast %44 : vector<4x8xf32> to vector<4x8x1xf32>
    %46 = vector.broadcast %45 : vector<4x8x1xf32> to vector<4x8x8xf32>
    %47 = arith.subf %43, %46 : vector<4x8x8xf32>
    %48 = math.exp %47 : vector<4x8x8xf32>
    %cst_11 = arith.constant dense<0.000000e+00> : vector<4x8xf32>
    %49 = vector.multi_reduction <add>, %48, %cst_11 [2] : vector<4x8x8xf32> to vector<4x8xf32>
    %50 = vector.shape_cast %49 : vector<4x8xf32> to vector<4x8x1xf32>
    %51 = tpu.reciprocal %50 {approx = true} : vector<4x8x1xf32> -> vector<4x8x1xf32>
    %52 = vector.broadcast %51 : vector<4x8x1xf32> to vector<4x8x8xf32>
    %53 = arith.mulf %48, %52 : vector<4x8x8xf32>
    %54 = arith.truncf %53 : vector<4x8x8xf32> to vector<4x8x8xbf16>
    %55 = arith.truncf %40 : vector<4x8x8xf32> to vector<4x8x8xbf16>
    "tpu.trace_start"() <{level = 10 : i32, message = "hqk,hkd->hqd"}> : () -> ()
    %cst_12 = arith.constant dense<0.000000e+00> : vector<4x8x8xf32>
    %56 = tpu.matmul %54, %55, %cst_12 {dimension_numbers = #tpu.dot_dimension_numbers<[2], [1], [1], [2], [0, 0, 0, 1, 1, 2], [0], [0]>} : vector<4x8x8xbf16>, vector<4x8x8xbf16>, vector<4x8x8xf32> -> vector<4x8x8xf32>
    "tpu.trace_stop"() : () -> ()
    %57 = vector.extract_strided_slice %56 {offsets = [0, 0, 0], sizes = [1, 8, 8], strides = [1, 1, 1]} : vector<4x8x8xf32> to vector<1x8x8xf32>
    %58 = vector.shape_cast %57 : vector<1x8x8xf32> to vector<8x8xf32>
    %59 = vector.extract_strided_slice %56 {offsets = [1, 0, 0], sizes = [1, 8, 8], strides = [1, 1, 1]} : vector<4x8x8xf32> to vector<1x8x8xf32>
    %60 = vector.shape_cast %59 : vector<1x8x8xf32> to vector<8x8xf32>
    %61 = vector.extract_strided_slice %56 {offsets = [2, 0, 0], sizes = [1, 8, 8], strides = [1, 1, 1]} : vector<4x8x8xf32> to vector<1x8x8xf32>
    %62 = vector.shape_cast %61 : vector<1x8x8xf32> to vector<8x8xf32>
    %63 = vector.extract_strided_slice %56 {offsets = [3, 0, 0], sizes = [1, 8, 8], strides = [1, 1, 1]} : vector<4x8x8xf32> to vector<1x8x8xf32>
    %64 = vector.shape_cast %63 : vector<1x8x8xf32> to vector<8x8xf32>
    %65 = tpu.concatenate %58, %60, %62, %64 in 1 : vector<8x8xf32>, vector<8x8xf32>, vector<8x8xf32>, vector<8x8xf32> -> vector<8x32xf32>
    %66 = vector.extract_strided_slice %12 {offsets = [8, 0], sizes = [8, 96], strides = [1, 1]} : vector<16x96xf32> to vector<8x96xf32>
    %67 = vector.extract_strided_slice %66 {offsets = [0, 0], sizes = [8, 8], strides = [1, 1]} : vector<8x96xf32> to vector<8x8xf32>
    %68 = vector.extract_strided_slice %66 {offsets = [0, 8], sizes = [8, 8], strides = [1, 1]} : vector<8x96xf32> to vector<8x8xf32>
    %69 = vector.extract_strided_slice %66 {offsets = [0, 16], sizes = [8, 8], strides = [1, 1]} : vector<8x96xf32> to vector<8x8xf32>
    %70 = vector.extract_strided_slice %66 {offsets = [0, 24], sizes = [8, 8], strides = [1, 1]} : vector<8x96xf32> to vector<8x8xf32>
    %71 = vector.shape_cast %67 : vector<8x8xf32> to vector<1x8x8xf32>
    %72 = vector.shape_cast %68 : vector<8x8xf32> to vector<1x8x8xf32>
    %73 = vector.shape_cast %69 : vector<8x8xf32> to vector<1x8x8xf32>
    %74 = vector.shape_cast %70 : vector<8x8xf32> to vector<1x8x8xf32>
    %75 = tpu.concatenate %71, %72, %73, %74 in 0 : vector<1x8x8xf32>, vector<1x8x8xf32>, vector<1x8x8xf32>, vector<1x8x8xf32> -> vector<4x8x8xf32>
    %76 = vector.extract_strided_slice %66 {offsets = [0, 32], sizes = [8, 8], strides = [1, 1]} : vector<8x96xf32> to vector<8x8xf32>
    %77 = vector.extract_strided_slice %66 {offsets = [0, 40], sizes = [8, 8], strides = [1, 1]} : vector<8x96xf32> to vector<8x8xf32>
    %78 = vector.extract_strided_slice %66 {offsets = [0, 48], sizes = [8, 8], strides = [1, 1]} : vector<8x96xf32> to vector<8x8xf32>
    %79 = vector.extract_strided_slice %66 {offsets = [0, 56], sizes = [8, 8], strides = [1, 1]} : vector<8x96xf32> to vector<8x8xf32>
    %80 = vector.shape_cast %76 : vector<8x8xf32> to vector<1x8x8xf32>
    %81 = vector.shape_cast %77 : vector<8x8xf32> to vector<1x8x8xf32>
    %82 = vector.shape_cast %78 : vector<8x8xf32> to vector<1x8x8xf32>
    %83 = vector.shape_cast %79 : vector<8x8xf32> to vector<1x8x8xf32>
    %84 = tpu.concatenate %80, %81, %82, %83 in 0 : vector<1x8x8xf32>, vector<1x8x8xf32>, vector<1x8x8xf32>, vector<1x8x8xf32> -> vector<4x8x8xf32>
    %85 = vector.extract_strided_slice %66 {offsets = [0, 64], sizes = [8, 8], strides = [1, 1]} : vector<8x96xf32> to vector<8x8xf32>
    %86 = vector.extract_strided_slice %66 {offsets = [0, 72], sizes = [8, 8], strides = [1, 1]} : vector<8x96xf32> to vector<8x8xf32>
    %87 = vector.extract_strided_slice %66 {offsets = [0, 80], sizes = [8, 8], strides = [1, 1]} : vector<8x96xf32> to vector<8x8xf32>
    %88 = vector.extract_strided_slice %66 {offsets = [0, 88], sizes = [8, 8], strides = [1, 1]} : vector<8x96xf32> to vector<8x8xf32>
    %89 = vector.shape_cast %85 : vector<8x8xf32> to vector<1x8x8xf32>
    %90 = vector.shape_cast %86 : vector<8x8xf32> to vector<1x8x8xf32>
    %91 = vector.shape_cast %87 : vector<8x8xf32> to vector<1x8x8xf32>
    %92 = vector.shape_cast %88 : vector<8x8xf32> to vector<1x8x8xf32>
    %93 = tpu.concatenate %89, %90, %91, %92 in 0 : vector<1x8x8xf32>, vector<1x8x8xf32>, vector<1x8x8xf32>, vector<1x8x8xf32> -> vector<4x8x8xf32>
    %94 = arith.truncf %75 : vector<4x8x8xf32> to vector<4x8x8xbf16>
    %95 = arith.truncf %84 : vector<4x8x8xf32> to vector<4x8x8xbf16>
    "tpu.trace_start"() <{level = 10 : i32, message = "hqd,hkd->hqk"}> : () -> ()
    %cst_13 = arith.constant dense<0.000000e+00> : vector<4x8x8xf32>
    %96 = tpu.matmul %94, %95, %cst_13 {dimension_numbers = #tpu.dot_dimension_numbers<[2], [2], [1], [1], [0, 0, 0, 1, 1, 1], [0], [0]>} : vector<4x8x8xbf16>, vector<4x8x8xbf16>, vector<4x8x8xf32> -> vector<4x8x8xf32>
    "tpu.trace_stop"() : () -> ()
    %cst_14 = arith.constant dense<0xFF800000> : vector<4x8xf32>
    %97 = vector.multi_reduction <maximumf>, %96, %cst_14 [2] : vector<4x8x8xf32> to vector<4x8xf32>
    %98 = vector.shape_cast %97 : vector<4x8xf32> to vector<4x8x1xf32>
    %99 = vector.broadcast %98 : vector<4x8x1xf32> to vector<4x8x8xf32>
    %100 = arith.subf %96, %99 : vector<4x8x8xf32>
    %101 = math.exp %100 : vector<4x8x8xf32>
    %cst_15 = arith.constant dense<0.000000e+00> : vector<4x8xf32>
    %102 = vector.multi_reduction <add>, %101, %cst_15 [2] : vector<4x8x8xf32> to vector<4x8xf32>
    %103 = vector.shape_cast %102 : vector<4x8xf32> to vector<4x8x1xf32>
    %104 = tpu.reciprocal %103 {approx = true} : vector<4x8x1xf32> -> vector<4x8x1xf32>
    %105 = vector.broadcast %104 : vector<4x8x1xf32> to vector<4x8x8xf32>
    %106 = arith.mulf %101, %105 : vector<4x8x8xf32>
    %107 = arith.truncf %106 : vector<4x8x8xf32> to vector<4x8x8xbf16>
    %108 = arith.truncf %93 : vector<4x8x8xf32> to vector<4x8x8xbf16>
    "tpu.trace_start"() <{level = 10 : i32, message = "hqk,hkd->hqd"}> : () -> ()
    %cst_16 = arith.constant dense<0.000000e+00> : vector<4x8x8xf32>
    %109 = tpu.matmul %107, %108, %cst_16 {dimension_numbers = #tpu.dot_dimension_numbers<[2], [1], [1], [2], [0, 0, 0, 1, 1, 2], [0], [0]>} : vector<4x8x8xbf16>, vector<4x8x8xbf16>, vector<4x8x8xf32> -> vector<4x8x8xf32>
    "tpu.trace_stop"() : () -> ()
    %110 = vector.extract_strided_slice %109 {offsets = [0, 0, 0], sizes = [1, 8, 8], strides = [1, 1, 1]} : vector<4x8x8xf32> to vector<1x8x8xf32>
    %111 = vector.shape_cast %110 : vector<1x8x8xf32> to vector<8x8xf32>
    %112 = vector.extract_strided_slice %109 {offsets = [1, 0, 0], sizes = [1, 8, 8], strides = [1, 1, 1]} : vector<4x8x8xf32> to vector<1x8x8xf32>
    %113 = vector.shape_cast %112 : vector<1x8x8xf32> to vector<8x8xf32>
    %114 = vector.extract_strided_slice %109 {offsets = [2, 0, 0], sizes = [1, 8, 8], strides = [1, 1, 1]} : vector<4x8x8xf32> to vector<1x8x8xf32>
    %115 = vector.shape_cast %114 : vector<1x8x8xf32> to vector<8x8xf32>
    %116 = vector.extract_strided_slice %109 {offsets = [3, 0, 0], sizes = [1, 8, 8], strides = [1, 1, 1]} : vector<4x8x8xf32> to vector<1x8x8xf32>
    %117 = vector.shape_cast %116 : vector<1x8x8xf32> to vector<8x8xf32>
    %118 = tpu.concatenate %111, %113, %115, %117 in 1 : vector<8x8xf32>, vector<8x8xf32>, vector<8x8xf32>, vector<8x8xf32> -> vector<8x32xf32>
    %119 = tpu.concatenate %65, %118 in 0 : vector<8x32xf32>, vector<8x32xf32> -> vector<16x32xf32>
    %120 = arith.truncf %119 : vector<16x32xf32> to vector<16x32xbf16>
    %c0_17 = arith.constant 0 : index
    %c0_18 = arith.constant 0 : index
    %c0_19 = arith.constant 0 : index
    %121 = vector.load %arg5[%c0_17, %c0_18, %c0_19] : memref<1x32x32xbf16, #tpu.memory_space<vmem>>, vector<1x32x32xbf16>
    %122 = vector.shape_cast %121 : vector<1x32x32xbf16> to vector<32x32xbf16>
    %cst_20 = arith.constant dense<0.000000e+00> : vector<16x32xf32>
    %123 = tpu.matmul %120, %122, %cst_20 {dimension_numbers = #tpu.dot_dimension_numbers<[1], [0], [0], [1], [0, 0, 1, 1], [], []>} : vector<16x32xbf16>, vector<32x32xbf16>, vector<16x32xf32> -> vector<16x32xf32>
    %c0_21 = arith.constant 0 : index
    %c0_22 = arith.constant 0 : index
    %c0_23 = arith.constant 0 : index
    %124 = vector.load %arg6[%c0_21, %c0_22, %c0_23] : memref<1x1x32xf32, #tpu.memory_space<vmem>>, vector<1x1x32xf32>
    %125 = vector.shape_cast %124 : vector<1x1x32xf32> to vector<1x32xf32>
    %126 = vector.broadcast %125 : vector<1x32xf32> to vector<16x32xf32>
    %127 = arith.addf %123, %126 : vector<16x32xf32>
    %128 = arith.addf %4, %127 : vector<16x32xf32>
    %c0_24 = arith.constant 0 : index
    %c0_25 = arith.constant 0 : index
    %c0_26 = arith.constant 0 : index
    %129 = vector.load %arg7[%c0_24, %c0_25, %c0_26] : memref<1x1x32xf32, #tpu.memory_space<vmem>>, vector<1x1x32xf32>
    %130 = vector.shape_cast %129 : vector<1x1x32xf32> to vector<1x32xf32>
    %c0_27 = arith.constant 0 : index
    %c0_28 = arith.constant 0 : index
    %c0_29 = arith.constant 0 : index
    %131 = vector.load %arg8[%c0_27, %c0_28, %c0_29] : memref<1x1x32xf32, #tpu.memory_space<vmem>>, vector<1x1x32xf32>
    %132 = vector.shape_cast %131 : vector<1x1x32xf32> to vector<1x32xf32>
    %cst_30 = arith.constant dense<0.000000e+00> : vector<16xf32>
    %133 = vector.multi_reduction <add>, %128, %cst_30 [1] : vector<16x32xf32> to vector<16xf32>
    %134 = vector.shape_cast %133 : vector<16xf32> to vector<16x1xf32>
    %cst_31 = arith.constant 3.200000e+01 : f32
    %135 = vector.broadcast %cst_31 : f32 to vector<16x1xf32>
    %136 = arith.divf %134, %135 : vector<16x1xf32>
    %137 = vector.broadcast %136 : vector<16x1xf32> to vector<16x32xf32>
    %138 = arith.subf %128, %137 : vector<16x32xf32>
    %139 = arith.mulf %138, %138 : vector<16x32xf32>
    %cst_32 = arith.constant dense<0.000000e+00> : vector<16xf32>
    %140 = vector.multi_reduction <add>, %139, %cst_32 [1] : vector<16x32xf32> to vector<16xf32>
    %141 = vector.shape_cast %140 : vector<16xf32> to vector<16x1xf32>
    %cst_33 = arith.constant 3.200000e+01 : f32
    %142 = vector.broadcast %cst_33 : f32 to vector<16x1xf32>
    %143 = arith.divf %141, %142 : vector<16x1xf32>
    %144 = vector.broadcast %136 : vector<16x1xf32> to vector<16x32xf32>
    %145 = arith.subf %128, %144 : vector<16x32xf32>
    %cst_34 = arith.constant 9.99999974E-6 : f32
    %146 = vector.broadcast %cst_34 : f32 to vector<16x1xf32>
    %147 = arith.addf %143, %146 : vector<16x1xf32>
    %148 = math.rsqrt %147 : vector<16x1xf32>
    %149 = vector.broadcast %148 : vector<16x1xf32> to vector<16x32xf32>
    %150 = arith.mulf %145, %149 : vector<16x32xf32>
    %151 = vector.broadcast %130 : vector<1x32xf32> to vector<16x32xf32>
    %152 = arith.mulf %150, %151 : vector<16x32xf32>
    %153 = vector.broadcast %132 : vector<1x32xf32> to vector<16x32xf32>
    %154 = arith.addf %152, %153 : vector<16x32xf32>
    %155 = arith.truncf %154 : vector<16x32xf32> to vector<16x32xbf16>
    %c0_35 = arith.constant 0 : index
    %c0_36 = arith.constant 0 : index
    %c0_37 = arith.constant 0 : index
    %156 = vector.load %arg9[%c0_35, %c0_36, %c0_37] : memref<1x32x128xbf16, #tpu.memory_space<vmem>>, vector<1x32x128xbf16>
    %157 = vector.shape_cast %156 : vector<1x32x128xbf16> to vector<32x128xbf16>
    %cst_38 = arith.constant dense<0.000000e+00> : vector<16x128xf32>
    %158 = tpu.matmul %155, %157, %cst_38 {dimension_numbers = #tpu.dot_dimension_numbers<[1], [0], [0], [1], [0, 0, 1, 1], [], []>} : vector<16x32xbf16>, vector<32x128xbf16>, vector<16x128xf32> -> vector<16x128xf32>
    %c0_39 = arith.constant 0 : index
    %c0_40 = arith.constant 0 : index
    %c0_41 = arith.constant 0 : index
    %159 = vector.load %arg10[%c0_39, %c0_40, %c0_41] : memref<1x1x128xf32, #tpu.memory_space<vmem>>, vector<1x1x128xf32>
    %160 = vector.shape_cast %159 : vector<1x1x128xf32> to vector<1x128xf32>
    %161 = vector.broadcast %160 : vector<1x128xf32> to vector<16x128xf32>
    %162 = arith.addf %158, %161 : vector<16x128xf32>
    %cst_42 = arith.constant 0.000000e+00 : f32
    %163 = vector.broadcast %cst_42 : f32 to vector<16x128xf32>
    %164 = arith.maximumf %162, %163 : vector<16x128xf32>
    %165 = arith.truncf %164 : vector<16x128xf32> to vector<16x128xbf16>
    %c0_43 = arith.constant 0 : index
    %c0_44 = arith.constant 0 : index
    %c0_45 = arith.constant 0 : index
    %166 = vector.load %arg11[%c0_43, %c0_44, %c0_45] : memref<1x128x32xbf16, #tpu.memory_space<vmem>>, vector<1x128x32xbf16>
    %167 = vector.shape_cast %166 : vector<1x128x32xbf16> to vector<128x32xbf16>
    %cst_46 = arith.constant dense<0.000000e+00> : vector<16x32xf32>
    %168 = tpu.matmul %165, %167, %cst_46 {dimension_numbers = #tpu.dot_dimension_numbers<[1], [0], [0], [1], [0, 0, 1, 1], [], []>} : vector<16x128xbf16>, vector<128x32xbf16>, vector<16x32xf32> -> vector<16x32xf32>
    %c0_47 = arith.constant 0 : index
    %c0_48 = arith.constant 0 : index
    %c0_49 = arith.constant 0 : index
    %169 = vector.load %arg12[%c0_47, %c0_48, %c0_49] : memref<1x1x32xf32, #tpu.memory_space<vmem>>, vector<1x1x32xf32>
    %170 = vector.shape_cast %169 : vector<1x1x32xf32> to vector<1x32xf32>
    %171 = vector.broadcast %170 : vector<1x32xf32> to vector<16x32xf32>
    %172 = arith.addf %168, %171 : vector<16x32xf32>
    %173 = arith.addf %154, %172 : vector<16x32xf32>
    %c0_50 = arith.constant 0 : index
    %c0_51 = arith.constant 0 : index
    %c0_52 = arith.constant 0 : index
    %174 = vector.load %arg13[%c0_50, %c0_51, %c0_52] : memref<1x1x32xf32, #tpu.memory_space<vmem>>, vector<1x1x32xf32>
    %175 = vector.shape_cast %174 : vector<1x1x32xf32> to vector<1x32xf32>
    %c0_53 = arith.constant 0 : index
    %c0_54 = arith.constant 0 : index
    %c0_55 = arith.constant 0 : index
    %176 = vector.load %arg14[%c0_53, %c0_54, %c0_55] : memref<1x1x32xf32, #tpu.memory_space<vmem>>, vector<1x1x32xf32>
    %177 = vector.shape_cast %176 : vector<1x1x32xf32> to vector<1x32xf32>
    %cst_56 = arith.constant dense<0.000000e+00> : vector<16xf32>
    %178 = vector.multi_reduction <add>, %173, %cst_56 [1] : vector<16x32xf32> to vector<16xf32>
    %179 = vector.shape_cast %178 : vector<16xf32> to vector<16x1xf32>
    %cst_57 = arith.constant 3.200000e+01 : f32
    %180 = vector.broadcast %cst_57 : f32 to vector<16x1xf32>
    %181 = arith.divf %179, %180 : vector<16x1xf32>
    %182 = vector.broadcast %181 : vector<16x1xf32> to vector<16x32xf32>
    %183 = arith.subf %173, %182 : vector<16x32xf32>
    %184 = arith.mulf %183, %183 : vector<16x32xf32>
    %cst_58 = arith.constant dense<0.000000e+00> : vector<16xf32>
    %185 = vector.multi_reduction <add>, %184, %cst_58 [1] : vector<16x32xf32> to vector<16xf32>
    %186 = vector.shape_cast %185 : vector<16xf32> to vector<16x1xf32>
    %cst_59 = arith.constant 3.200000e+01 : f32
    %187 = vector.broadcast %cst_59 : f32 to vector<16x1xf32>
    %188 = arith.divf %186, %187 : vector<16x1xf32>
    %189 = vector.broadcast %181 : vector<16x1xf32> to vector<16x32xf32>
    %190 = arith.subf %173, %189 : vector<16x32xf32>
    %cst_60 = arith.constant 9.99999974E-6 : f32
    %191 = vector.broadcast %cst_60 : f32 to vector<16x1xf32>
    %192 = arith.addf %188, %191 : vector<16x1xf32>
    %193 = math.rsqrt %192 : vector<16x1xf32>
    %194 = vector.broadcast %193 : vector<16x1xf32> to vector<16x32xf32>
    %195 = arith.mulf %190, %194 : vector<16x32xf32>
    %196 = vector.broadcast %175 : vector<1x32xf32> to vector<16x32xf32>
    %197 = arith.mulf %195, %196 : vector<16x32xf32>
    %198 = vector.broadcast %177 : vector<1x32xf32> to vector<16x32xf32>
    %199 = arith.addf %197, %198 : vector<16x32xf32>
    %200 = vector.shape_cast %199 : vector<16x32xf32> to vector<2x8x32xf32>
    %c0_61 = arith.constant 0 : index
    %c0_62 = arith.constant 0 : index
    %c0_63 = arith.constant 0 : index
    %201 = vector.load %arg15[%c0_61, %c0_62, %c0_63] : memref<2x8x32xf32, #tpu.memory_space<vmem>>, vector<2x8x32xf32>
    tpu.vector_store %arg15[%c0_61, %c0_62, %c0_63], %200 {strides = array<i32>} : memref<2x8x32xf32, #tpu.memory_space<vmem>>, vector<2x8x32xf32>,
    return
  }
  func.func @transform_0(%arg0: i32, %arg1: i32) -> (i32, i32, i32) {
    %c0_i32 = arith.constant 0 : i32
    %c0_i32_0 = arith.constant 0 : i32
    %c0_i32_1 = arith.constant 0 : i32
    return %arg0, %c0_i32, %c0_i32_0 : i32, i32, i32
  }
  func.func @transform_1(%arg0: i32, %arg1: i32) -> (i32, i32, i32) {
    %c0_i32 = arith.constant 0 : i32
    %c0_i32_0 = arith.constant 0 : i32
    %c0_i32_1 = arith.constant 0 : i32
    return %arg1, %c0_i32, %c0_i32_0 : i32, i32, i32
  }
  func.func @transform_2(%arg0: i32, %arg1: i32) -> (i32, i32, i32) {
    %c0_i32 = arith.constant 0 : i32
    %c0_i32_0 = arith.constant 0 : i32
    %c0_i32_1 = arith.constant 0 : i32
    return %arg1, %c0_i32, %c0_i32_0 : i32, i32, i32
  }
  func.func @transform_3(%arg0: i32, %arg1: i32) -> (i32, i32, i32) {
    %c0_i32 = arith.constant 0 : i32
    %c0_i32_0 = arith.constant 0 : i32
    %c0_i32_1 = arith.constant 0 : i32
    return %arg1, %c0_i32, %c0_i32_0 : i32, i32, i32
  }
  func.func @transform_4(%arg0: i32, %arg1: i32) -> (i32, i32, i32) {
    %c0_i32 = arith.constant 0 : i32
    %c0_i32_0 = arith.constant 0 : i32
    %c0_i32_1 = arith.constant 0 : i32
    return %arg1, %c0_i32, %c0_i32_0 : i32, i32, i32
  }
  func.func @transform_5(%arg0: i32, %arg1: i32) -> (i32, i32, i32) {
    %c0_i32 = arith.constant 0 : i32
    %c0_i32_0 = arith.constant 0 : i32
    %c0_i32_1 = arith.constant 0 : i32
    return %arg1, %c0_i32, %c0_i32_0 : i32, i32, i32
  }
  func.func @transform_6(%arg0: i32, %arg1: i32) -> (i32, i32, i32) {
    %c0_i32 = arith.constant 0 : i32
    %c0_i32_0 = arith.constant 0 : i32
    %c0_i32_1 = arith.constant 0 : i32
    return %arg1, %c0_i32, %c0_i32_0 : i32, i32, i32
  }
  func.func @transform_7(%arg0: i32, %arg1: i32) -> (i32, i32, i32) {
    %c0_i32 = arith.constant 0 : i32
    %c0_i32_0 = arith.constant 0 : i32
    %c0_i32_1 = arith.constant 0 : i32
    return %arg1, %c0_i32, %c0_i32_0 : i32, i32, i32
  }
  func.func @transform_8(%arg0: i32, %arg1: i32) -> (i32, i32, i32) {
    %c0_i32 = arith.constant 0 : i32
    %c0_i32_0 = arith.constant 0 : i32
    %c0_i32_1 = arith.constant 0 : i32
    return %arg1, %c0_i32, %c0_i32_0 : i32, i32, i32
  }
  func.func @transform_9(%arg0: i32, %arg1: i32) -> (i32, i32, i32) {
    %c0_i32 = arith.constant 0 : i32
    %c0_i32_0 = arith.constant 0 : i32
    %c0_i32_1 = arith.constant 0 : i32
    return %arg1, %c0_i32, %c0_i32_0 : i32, i32, i32
  }
  func.func @transform_10(%arg0: i32, %arg1: i32) -> (i32, i32, i32) {
    %c0_i32 = arith.constant 0 : i32
    %c0_i32_0 = arith.constant 0 : i32
    %c0_i32_1 = arith.constant 0 : i32
    return %arg1, %c0_i32, %c0_i32_0 : i32, i32, i32
  }
  func.func @transform_11(%arg0: i32, %arg1: i32) -> (i32, i32, i32) {
    %c0_i32 = arith.constant 0 : i32
    %c0_i32_0 = arith.constant 0 : i32
    %c0_i32_1 = arith.constant 0 : i32
    return %arg1, %c0_i32, %c0_i32_0 : i32, i32, i32
  }
  func.func @transform_12(%arg0: i32, %arg1: i32) -> (i32, i32, i32) {
    %c0_i32 = arith.constant 0 : i32
    %c0_i32_0 = arith.constant 0 : i32
    %c0_i32_1 = arith.constant 0 : i32
    return %arg1, %c0_i32, %c0_i32_0 : i32, i32, i32
  }
  func.func @transform_13(%arg0: i32, %arg1: i32) -> (i32, i32, i32) {
    %c0_i32 = arith.constant 0 : i32
    %c0_i32_0 = arith.constant 0 : i32
    %c0_i32_1 = arith.constant 0 : i32
    return %arg0, %c0_i32, %c0_i32_0 : i32, i32, i32
  }
}

</mosaic_0001>

<bundles_post_ra>
// kernel: tpu_custom_call.1
= control target key start
LH: loop header
LB: loop body
LE: loop exit
PB: predicated region body
PF: predicated region fallthrough
CT: control target
= control target key end

     0   :  { %s4699_s0 = inlined_call_operand.hbm [shape: f32[4,8,32], index: 0, kind: input, shape index: {}]   ;;  %s4700_s1 = inlined_call_operand.hbm [shape: bf16[2,32,96], index: 1, kind: input, shape index: {}]   ;;  %s4701_s2 = inlined_call_operand.hbm [shape: f32[2,1,96], index: 2, kind: input, shape index: {}]   ;;  %s4702_s3 = inlined_call_operand.hbm [shape: bf16[2,32,32], index: 3, kind: input, shape index: {}]   ;;  %s4703_s4 = inlined_call_operand.hbm [shape: f32[2,1,32], index: 4, kind: input, shape index: {}]   ;;  %s4704_s5 = inlined_call_operand.hbm [shape: f32[2,1,32], index: 5, kind: input, shape index: {}]   ;;  %s4705_s6 = inlined_call_operand.hbm [shape: f32[2,1,32], index: 6, kind: input, shape index: {}]   ;;  %s4706_s7 = inlined_call_operand.hbm [shape: bf16[2,32,128], index: 7, kind: input, shape index: {}]   ;;  %s4707_s8 = inlined_call_operand.hbm [shape: f32[2,1,128], index: 8, kind: input, shape index: {}]   ;;  %s4708_s9 = inlined_call_operand.hbm [shape: bf16[2,128,32], index: 9, kind: input, shape index: {}]   ;;  %s4709_s10 = inlined_call_operand.hbm [shape: f32[2,1,32], index: 10, kind: input, shape index: {}]   ;;  %s4710_s11 = inlined_call_operand.hbm [shape: f32[2,1,32], index: 11, kind: input, shape index: {}]   ;;  %s4711_s12 = inlined_call_operand.hbm [shape: f32[2,1,32], index: 12, kind: input, shape index: {}]   ;;  %s4712_s13 = inlined_call_operand.hbm [shape: f32[4,8,32], index: 13, kind: output, shape index: {}]  }
   0x1   :  { %4750 = sst [smem:[#allocation45_spill]] %s4699_s0 }
   0x2   :  { %4751 = sst [smem:[#allocation46_spill]] %s4700_s1 }
   0x3   :  { %4752 = sst [smem:[#allocation47_spill]] %s4701_s2 }
   0x4   :  { %4753 = sst [smem:[#allocation48_spill]] %s4702_s3 }
   0x5   :  { %4754 = sst [smem:[#allocation49_spill]] %s4703_s4 }
   0x6   :  { %4755 = sst [smem:[#allocation50_spill]] %s4704_s5 }
   0x7   :  { %4756 = sst [smem:[#allocation51_spill]] %s4705_s6 }
   0x8   :  { %4757 = sst [smem:[#allocation52_spill]] %s4706_s7 }
   0x9   :  { %4758 = sst [smem:[#allocation53_spill]] %s4707_s8 }
   0xa   :  { %4759 = sst [smem:[#allocation54_spill]] %s4708_s9 }
   0xb   :  { %4760 = sst [smem:[#allocation55_spill]] %s4709_s10 }
   0xc   :  { %4761 = sst [smem:[#allocation56_spill]] %s4710_s11 }
   0xd   :  { %4762 = sst [smem:[#allocation57_spill]] %s4711_s12 }
   0xe   :  { %4763 = sst [smem:[#allocation58_spill]] %s4712_s13 }
   0xf   :  { %18 = vsyncpa [#allocation3], 0 }
  0x10   :  { %20 = vsyncpa [#allocation3 + $0x1], 0 }
  0x11   :  { %21 = vsyncpa [#allocation6], 0 }
  0x12   :  { %23 = vsyncpa [#allocation6 + $0x1], 0 }
  0x13   :  { %24 = vsyncpa [#allocation9], 0 }
  0x14   :  { %26 = vsyncpa [#allocation9 + $0x1], 0 }
  0x15   :  { %27 = vsyncpa [#allocation12], 0 }
  0x16   :  { %29 = vsyncpa [#allocation12 + $0x1], 0 }
  0x17   :  { %30 = vsyncpa [#allocation15], 0 }
  0x18   :  { %32 = vsyncpa [#allocation15 + $0x1], 0 }
  0x19   :  { %33 = vsyncpa [#allocation18], 0 }
  0x1a   :  { %35 = vsyncpa [#allocation18 + $0x1], 0 }
  0x1b   :  { %36 = vsyncpa [#allocation21], 0 }
  0x1c   :  { %38 = vsyncpa [#allocation21 + $0x1], 0 }
  0x1d   :  { %39 = vsyncpa [#allocation4], 0 }
  0x1e   :  { %41 = vsyncpa [#allocation4 + $0x1], 0  ;;  %s3740_s25 = smov 0   ;;  %s3742_s26 = smov 0  }
  0x1f   :  { %s3744_s27 = smov 0   ;;  %s3746_s28 = smov 0  }
  0x20   :  { %s3748_s29 = smov 0   ;;  %s3750_s30 = smov 0  }
  0x21   :  { %s3752_s14 = smov 0   ;;  %s3754_s15 = smov 0  }
  0x22   :  { %s3756_s16 = smov 0   ;;  %s3758_s17 = smov 0  }
  0x23   :  { %s3760_s18 = smov 0  }
  0x24 LB: > { %4764 = sst [smem:[#allocation32_spill]] %s3599_s25  ;;  %p4721_p0 = scmp.eq.s32.totalorder %s3639_s18, 0  ;;  %s3639_s18 = sphi %s3760_s18, %s47_s18   ;;  %s3635_s17 = sphi %s3758_s17, %s4843_s17   ;;  %s3631_s16 = sphi %s3756_s16, %s4842_s16   ;;  %s3627_s15 = sphi %s3754_s15, %s4841_s15   ;;  %s3623_s14 = sphi %s3752_s14, %s4840_s14   ;;  %s3619_s30 = sphi %s3750_s30, %s4839_s30   ;;  %s3615_s29 = sphi %s3748_s29, %s4845_s29   ;;  %s3611_s28 = sphi %s3746_s28, %s4844_s28   ;;  %s3607_s27 = sphi %s3744_s27, %s4837_s27   ;;  %s3603_s26 = sphi %s3742_s26, %s4836_s26   ;;  %s3599_s25 = sphi %s3740_s25, %s4835_s25  }
  0x25   : > { %4765 = sst [smem:[#allocation33_spill]] %s3603_s26  ;;  %p99_p1 = scmp.ne.s32.totalorder %s3607_s27, %s3603_s26 }
  0x26   : > { %4766 = sst [smem:[#allocation34_spill]] %s3607_s27  ;;  %p4720_p2 = scmp.lt.s32.totalorder %s3639_s18, 4 }
  0x27   : > { %4767 = sst [smem:[#allocation35_spill]] %s3619_s30  ;;  %p101_p3 = por %p99_p1, %p4721_p0 }
  0x28   : > { %4768 = sst [smem:[#allocation36_spill]] %s3623_s14  ;;  %s3802_s19 = sand.u32 1, %s3639_s18  }
  0x29   : > { %4769 = sst [smem:[#allocation37_spill]] %s3627_s15  ;;  %s3805_s20 = sand.u32 1, %s3607_s27  }
  0x2a   : > { %4770 = sst [smem:[#allocation38_spill]] %s3631_s16  ;;  %s3808_s21 = sshll.u32 %s3805_s20, 4 }
  0x2b   : > { %4771 = sst [smem:[#allocation39_spill]] %s3635_s17  ;;  %s3811_s22 = sshll.u32 %s3631_s16, 8 }
  0x2c   : > { %s4772_s1 = sld [smem:[#allocation46_spill]]  ;;  %s466_s15 = scalar_lea.vmem [#allocation5], %s3808_s21 }
  0x2d   : > { %s473_s14 = sshll.u32 %s466_s15, 4  ;;  %p3822_p4 = pnand %p4720_p2, %p101_p3  ;;  %s3826_s14 = int_to_ptr.vmem [resolvable:$true] %s473_s14 }
  0x2f   : > { %s4773_s12 = scalar_select %p3822_p4, 1, 0 }
  0x30   : > { %p3833_p6 = pneg %p3822_p4 }
  0x32   : > { %s3817_s13 = scalar_lea.hbm %s4772_s1, %s3811_s22  ;;  %s3108_s6 = scalar_lea.hbm %s4772_s1, 512 }
  0x33   : > { %s3103_s8 = scalar_lea.hbm %s3817_s13, 256  ;;  %p3109_p9 = scmp.lt.u32.totalorder %s3817_s13, %s4772_s1 }
  0x34   : > { %p3104_p5 = scmp.ne.s32.totalorder %s3817_s13, %s3103_s8  ;;  %p3110_p10 = scmp.lt.u32.totalorder %s3108_s6, %s3103_s8 }
  0x35   : > { %p3112_p12 = scmp.lt.u32.totalorder %s3103_s8, %s3817_s13 }
  0x36   : > { %p3106_p7 = pnand %p3833_p6, %p3104_p5  ;;  %p3111_p11 = por %p3110_p10, %p3109_p9 }
  0x38   : > { %p3107_p8 = pneg %p3106_p7  ;;  %p3113_p13 = por %p3112_p12, %p3111_p11 }
  0x3a   : > { %p3114_p1 = pnand %p3113_p13, %p3107_p8 }
  0x3c   : > { %3117 = shalt.err (!%p3114_p1)
}
  0x3d   : > { %s3118_s10 = scalar_lea.vmem %s3826_s14, 256  ;;  %s3641_s15 = smov [#allocation5]  }
  0x3e   : > { %p3119_p3 = scmp.ne.s32.totalorder %s3826_s14, %s3118_s10  ;;  %s3123_s24 = sshll.u32 %s3641_s15, 4  ;;  %s3124_s24 = int_to_ptr.vmem [resolvable:$false] %s3123_s24 }
  0x3f   : > { %s3125_s2 = scalar_lea.vmem %s3124_s24, 512  ;;  %p3126_p2 = scmp.lt.s32.totalorder %s3826_s14, %s3124_s24 }
  0x40   : > { %p3121_p5 = pnand %p3119_p3, %p3833_p6  ;;  %p3127_p0 = scmp.lt.s32.totalorder %s3125_s2, %s3118_s10 }
  0x42   : > { %p3122_p7 = pneg %p3121_p5  ;;  %p3128_p9 = por %p3127_p0, %p3126_p2 }
  0x44   : > { %p3129_p10 = pnand %p3128_p9, %p3122_p7 }
  0x46   : > { %3132 = shalt.err (!%p3129_p10)
}
  0x47   : > { %s4724_s4 = smov 64   ;;  %s4726_s6 = smov 4  }
  0x48   : > { %s4775_s8 = scalar_lea.sflag [#allocation6], %s3802_s19  ;;  %p2607_p0 = scmp.ge.s32.totalorder %s3639_s18, 1 }
  0x49   : > { %2891 = dma.hbm_to_vmem [thread:$0]  (!%p3822_p4), %s3817_s13, 256, %s3826_s14, %s4775_s8, %s4724_s4, %s4724_s4, %s4726_s6  }
  0x4a   : > { %p680_p2 = scmp.lt.s32.totalorder %s3639_s18, 5  ;;  %s4778_s3 = sld [smem:[#allocation48_spill]] }
  0x4b   : > { %s504_s1 = scalar_lea.vmem [#allocation8], %s3808_s21  ;;  %s3875_s26 = sshll.u32 %s3631_s16, 4 }
  0x4c   : > { %p3863_p8 = pnand %p2607_p0, %p680_p2  ;;  %s511_s0 = sshll.u32 %s504_s1, 4  ;;  %s3877_s0 = int_to_ptr.vmem [resolvable:$true] %s511_s0 }
  0x4d   : > { %s4729_s13 = scalar_lea.sflag [#allocation9], %s3802_s19 }
  0x4e   : > { %s4776_s10 = scalar_select %p3863_p8, 1, 0 }
  0x50   : > { %4777 = sst [smem:[#allocation40_spill]] %s4776_s10  ;;  %s3871_s2 = scalar_lea.hbm %s4778_s3, %s3811_s22 }
  0x51   : > { %s3133_s14 = scalar_lea.hbm %s3871_s2, 256  ;;  %s3138_s24 = scalar_lea.hbm %s4778_s3, 512 }
  0x52   : > { %p3134_p11 = scmp.ne.s32.totalorder %s3871_s2, %s3133_s14  ;;  %p3139_p1 = scmp.lt.u32.totalorder %s3871_s2, %s4778_s3 }
  0x53   : > { %p3140_p3 = scmp.lt.u32.totalorder %s3138_s24, %s3133_s14  ;;  %p3142_p7 = scmp.lt.u32.totalorder %s3133_s14, %s3871_s2 }
  0x54   : > { %p3136_p12 = pnand %p3134_p11, %p3833_p6 }
  0x55   : > { %p3141_p5 = por %p3140_p3, %p3139_p1 }
  0x56   : > { %p3137_p13 = pneg %p3136_p12 }
  0x57   : > { %p3143_p9 = por %p3142_p7, %p3141_p5 }
  0x59   : > { %p3144_p10 = pnand %p3143_p9, %p3137_p13 }
  0x5b   : > { %3147 = shalt.err (!%p3144_p10)
}
  0x5c   : > { %s3148_s1 = scalar_lea.vmem %s3877_s0, 256  ;;  %s3644_s8 = smov [#allocation8]  }
  0x5d   : > { %p3149_p0 = scmp.ne.s32.totalorder %s3877_s0, %s3148_s1  ;;  %s3153_s15 = sshll.u32 %s3644_s8, 4  ;;  %s3154_s15 = int_to_ptr.vmem [resolvable:$false] %s3153_s15 }
  0x5e   : > { %s3155_s4 = scalar_lea.vmem %s3154_s15, 512  ;;  %p3156_p12 = scmp.lt.s32.totalorder %s3877_s0, %s3154_s15 }
  0x5f   : > { %p3151_p2 = pnand %p3149_p0, %p3833_p6  ;;  %p3157_p8 = scmp.lt.s32.totalorder %s3155_s4, %s3148_s1 }
  0x61   : > { %p3152_p11 = pneg %p3151_p2  ;;  %p3158_p1 = por %p3157_p8, %p3156_p12 }
  0x63   : > { %p3159_p3 = pnand %p3158_p1, %p3152_p11 }
  0x65   : > { %3162 = shalt.err (!%p3159_p3)
}
  0x66   : > { %s4779_s6 = smov 4   ;;  %s4780_s14 = smov 64  }
  0x67   : > { %2897 = dma.hbm_to_vmem [thread:$0]  (!%p3822_p4), %s3871_s2, 256, %s3877_s0, %s4729_s13, %s4780_s14, %s4780_s14, %s4779_s6  }
  0x68   : > { %s4781_s5 = sld [smem:[#allocation50_spill]]  ;;  %s541_s15 = scalar_lea.vmem [#allocation11], %s3805_s20 }
  0x69   : > { %s548_s4 = sshll.u32 %s541_s15, 4  ;;  %s549_s4 = int_to_ptr.vmem [resolvable:$true] %s548_s4 }
  0x6e   : > { %s3910_s1 = scalar_lea.hbm %s4781_s5, %s3875_s26  ;;  %s3168_s2 = scalar_lea.hbm %s4781_s5, 32 }
  0x6f   : > { %s3163_s10 = scalar_lea.hbm %s3910_s1, 16  ;;  %p3169_p7 = scmp.lt.u32.totalorder %s3910_s1, %s4781_s5 }
  0x70   : > { %p3164_p8 = scmp.ne.s32.totalorder %s3910_s1, %s3163_s10  ;;  %p3170_p9 = scmp.lt.u32.totalorder %s3168_s2, %s3163_s10 }
  0x71   : > { %p3172_p0 = scmp.lt.u32.totalorder %s3163_s10, %s3910_s1 }
  0x72   : > { %p3166_p13 = pnand %p3164_p8, %p3833_p6  ;;  %p3171_p10 = por %p3170_p9, %p3169_p7 }
  0x74   : > { %p3167_p5 = pneg %p3166_p13  ;;  %p3173_p2 = por %p3172_p0, %p3171_p10 }
  0x76   : > { %p3174_p11 = pnand %p3173_p2, %p3167_p5 }
  0x78   : > { %3177 = shalt.err (!%p3174_p11)
}
  0x79   : > { %s3178_s15 = scalar_lea.vmem %s549_s4, 16  ;;  %s3645_s13 = smov [#allocation11]  }
  0x7a   : > { %p3179_p12 = scmp.ne.s32.totalorder %s549_s4, %s3178_s15  ;;  %s3183_s3 = sshll.u32 %s3645_s13, 4  ;;  %s3184_s3 = int_to_ptr.vmem [resolvable:$false] %s3183_s3 }
  0x7b   : > { %s3185_s25 = scalar_lea.vmem %s3184_s3, 32  ;;  %p3186_p8 = scmp.lt.s32.totalorder %s549_s4, %s3184_s3 }
  0x7c   : > { %p3181_p1 = pnand %p3179_p12, %p3833_p6  ;;  %p3187_p13 = scmp.lt.s32.totalorder %s3185_s25, %s3178_s15 }
  0x7e   : > { %p3182_p3 = pneg %p3181_p1  ;;  %p3188_p4 = por %p3187_p13, %p3186_p8 }
  0x80   : > { %p3189_p7 = pnand %p3188_p4, %p3182_p3 }
  0x82   : > { %3192 = shalt.err (!%p3189_p7)
}
  0x83   : > { %p4782_p9 = scmp.ne.s32.totalorder %s4773_s12, 0  ;;  %s4783_s10 = scalar_lea.sflag [#allocation12], %s3802_s19 }
  0x84   : > { %s4784_s7 = sld [smem:[#allocation52_spill]]  ;;  %s576_s3 = scalar_lea.vmem [#allocation14], %s3808_s21 }
  0x85   : > { %2903 = dma.hbm_to_vmem [thread:$0]  (!%p4782_p9), %s3910_s1, 16, %s549_s4, %s4783_s10  }
  0x86   : > { %s583_s24 = sshll.u32 %s576_s3, 4  ;;  %s4735_s8 = scalar_lea.sflag [#allocation15], %s3802_s19  ;;  %s3940_s24 = int_to_ptr.vmem [resolvable:$true] %s583_s24 }
  0x8a   : > { %s3937_s13 = scalar_lea.hbm %s4784_s7, %s3811_s22  ;;  %s3198_s25 = scalar_lea.hbm %s4784_s7, 512 }
  0x8b   : > { %s3193_s15 = scalar_lea.hbm %s3937_s13, 256  ;;  %p3199_p0 = scmp.lt.u32.totalorder %s3937_s13, %s4784_s7 }
  0x8c   : > { %p3194_p4 = scmp.ne.s32.totalorder %s3937_s13, %s3193_s15  ;;  %p3200_p2 = scmp.lt.u32.totalorder %s3198_s25, %s3193_s15 }
  0x8d   : > { %p3202_p12 = scmp.lt.u32.totalorder %s3193_s15, %s3937_s13 }
  0x8e   : > { %p3196_p5 = pnand %p3194_p4, %p3833_p6  ;;  %p3201_p11 = por %p3200_p2, %p3199_p0 }
  0x90   : > { %p3197_p10 = pneg %p3196_p5  ;;  %p3203_p1 = por %p3202_p12, %p3201_p11 }
  0x92   : > { %p3204_p3 = pnand %p3203_p1, %p3197_p10 }
  0x94   : > { %3207 = shalt.err (!%p3204_p3)
}
  0x95   : > { %s3208_s21 = scalar_lea.vmem %s3940_s24, 256  ;;  %s3646_s0 = smov [#allocation14]  }
  0x96   : > { %p3209_p8 = scmp.ne.s32.totalorder %s3940_s24, %s3208_s21  ;;  %s3213_s2 = sshll.u32 %s3646_s0, 4  ;;  %s3214_s2 = int_to_ptr.vmem [resolvable:$false] %s3213_s2 }
  0x97   : > { %s3215_s3 = scalar_lea.vmem %s3214_s2, 512  ;;  %p3216_p4 = scmp.lt.s32.totalorder %s3940_s24, %s3214_s2 }
  0x98   : > { %p3211_p13 = pnand %p3209_p8, %p3833_p6  ;;  %p3217_p5 = scmp.lt.s32.totalorder %s3215_s3, %s3208_s21 }
  0x9a   : > { %p3212_p7 = pneg %p3211_p13  ;;  %p3218_p0 = por %p3217_p5, %p3216_p4 }
  0x9c   : > { %p3219_p2 = pnand %p3218_p0, %p3212_p7 }
  0x9e   : > { %3222 = shalt.err (!%p3219_p2)
}
  0x9f   : > { %2909 = dma.hbm_to_vmem [thread:$0]  (!%p4782_p9), %s3937_s13, 256, %s3940_s24, %s4735_s8, %s4780_s14, %s4780_s14, %s4779_s6  }
  0xa0   : > { %s2601_s15 = sshll.u32 %s3805_s20, 6  ;;  %s2665_s1 = sshll.u32 %s3631_s16, 10 }
  0xa1   : > { %s4785_s9 = sld [smem:[#allocation54_spill]]  ;;  %s614_s10 = scalar_lea.vmem [#allocation17], %s2601_s15 }
  0xa2   : > { %s621_s21 = sshll.u32 %s614_s10, 4  ;;  %s4734_s0 = scalar_lea.sflag [#allocation18], %s3802_s19  ;;  %s3976_s21 = int_to_ptr.vmem [resolvable:$true] %s621_s21 }
  0xa7   : > { %s3974_s22 = scalar_lea.hbm %s4785_s9, %s2665_s1  ;;  %s3228_s3 = scalar_lea.hbm %s4785_s9, 2048 }
  0xa8   : > { %s3223_s2 = scalar_lea.hbm %s3974_s22, 1024  ;;  %p3229_p1 = scmp.lt.u32.totalorder %s3974_s22, %s4785_s9 }
  0xa9   : > { %p3224_p10 = scmp.ne.s32.totalorder %s3974_s22, %s3223_s2  ;;  %p3230_p3 = scmp.lt.u32.totalorder %s3228_s3, %s3223_s2 }
  0xaa   : > { %p3232_p13 = scmp.lt.u32.totalorder %s3223_s2, %s3974_s22 }
  0xab   : > { %p3226_p11 = pnand %p3224_p10, %p3833_p6  ;;  %p3231_p8 = por %p3230_p3, %p3229_p1 }
  0xad   : > { %p3227_p12 = pneg %p3226_p11  ;;  %p3233_p7 = por %p3232_p13, %p3231_p8 }
  0xaf   : > { %p3234_p4 = pnand %p3233_p7, %p3227_p12 }
  0xb1   : > { %3237 = shalt.err (!%p3234_p4)
}
  0xb2   : > { %s3238_s15 = scalar_lea.vmem %s3976_s21, 1024  ;;  %s3647_s25 = smov [#allocation17]  }
  0xb3   : > { %p3239_p5 = scmp.ne.s32.totalorder %s3976_s21, %s3238_s15  ;;  %s3243_s10 = sshll.u32 %s3647_s25, 4  ;;  %s3244_s10 = int_to_ptr.vmem [resolvable:$false] %s3243_s10 }
  0xb4   : > { %s3245_s13 = scalar_lea.vmem %s3244_s10, 2048  ;;  %p3246_p10 = scmp.lt.s32.totalorder %s3976_s21, %s3244_s10 }
  0xb5   : > { %p3241_p0 = pnand %p3239_p5, %p3833_p6  ;;  %p3247_p11 = scmp.lt.s32.totalorder %s3245_s13, %s3238_s15 }
  0xb7   : > { %p3242_p2 = pneg %p3241_p0  ;;  %p3248_p1 = por %p3247_p11, %p3246_p10 }
  0xb9   : > { %p3249_p3 = pnand %p3248_p1, %p3242_p2 }
  0xbb   : > { %3252 = shalt.err (!%p3249_p3)
}
  0xbc   : > { %2915 = dma.hbm_to_vmem [thread:$0]  (!%p4782_p9), %s3974_s22, 1024, %s3976_s21, %s4734_s0, %s4780_s14, %s4780_s14, %s4779_s6  }
  0xbd   : > { %s4786_s11 = sld [smem:[#allocation56_spill]]  ;;  %s651_s1 = scalar_lea.vmem [#allocation20], %s3805_s20 }
  0xbe   : > { %s658_s4 = sshll.u32 %s651_s1, 4  ;;  %s4733_s15 = scalar_lea.sflag [#allocation21], %s3802_s19  ;;  %s659_s4 = int_to_ptr.vmem [resolvable:$true] %s658_s4 }
  0xc3   : > { %s4009_s3 = scalar_lea.hbm %s4786_s11, %s3875_s26  ;;  %s3258_s14 = scalar_lea.hbm %s4786_s11, 32 }
  0xc4   : > { %s3253_s25 = scalar_lea.hbm %s4009_s3, 16  ;;  %p3259_p7 = scmp.lt.u32.totalorder %s4009_s3, %s4786_s11 }
  0xc5   : > { %p3254_p12 = scmp.ne.s32.totalorder %s4009_s3, %s3253_s25  ;;  %p3260_p4 = scmp.lt.u32.totalorder %s3258_s14, %s3253_s25 }
  0xc6   : > { %p3262_p0 = scmp.lt.u32.totalorder %s3253_s25, %s4009_s3 }
  0xc7   : > { %p3256_p8 = pnand %p3254_p12, %p3833_p6  ;;  %p3261_p5 = por %p3260_p4, %p3259_p7 }
  0xc9   : > { %p3257_p13 = pneg %p3256_p8  ;;  %p3263_p2 = por %p3262_p0, %p3261_p5 }
  0xcb   : > { %p3264_p10 = pnand %p3263_p2, %p3257_p13 }
  0xcd   : > { %3267 = shalt.err (!%p3264_p10)
}
  0xce   : > { %s3268_s13 = scalar_lea.vmem %s659_s4, 16  ;;  %s3648_s2 = smov [#allocation20]  }
  0xcf   : > { %p3269_p11 = scmp.ne.s32.totalorder %s659_s4, %s3268_s13  ;;  %s3273_s24 = sshll.u32 %s3648_s2, 4  ;;  %s3274_s24 = int_to_ptr.vmem [resolvable:$false] %s3273_s24 }
  0xd0   : > { %s3275_s1 = scalar_lea.vmem %s3274_s24, 32  ;;  %p3276_p12 = scmp.lt.s32.totalorder %s659_s4, %s3274_s24 }
  0xd1   : > { %p3271_p1 = pnand %p3269_p11, %p3833_p6  ;;  %p3277_p8 = scmp.lt.s32.totalorder %s3275_s1, %s3268_s13 }
  0xd3   : > { %p3272_p3 = pneg %p3271_p1  ;;  %p3278_p9 = por %p3277_p8, %p3276_p12 }
  0xd5   : > { %p3279_p4 = pnand %p3278_p9, %p3272_p3 }
  0xd7   : > { %3282 = shalt.err (!%p3279_p4)
}
  0xd8   : > { %p4787_p7 = scmp.ne.s32.totalorder %s4773_s12, 0  ;;  %s4033_s25 = sadd.s32 4294967295, %s3639_s18  }
  0xd9   : > { %s2581_s10 = sadd.s32 4294967294, %s3639_s18   ;;  %s56_s6 = sadd.s32 1, %s3631_s16 }
  0xda   : > { %2921 = dma.hbm_to_vmem [thread:$0]  (!%p4787_p7), %s4009_s3, 16, %s659_s4, %s4733_s15  }
  0xdb   : > { %p57_p9 = scmp.ge.s32.totalorder %s56_s6, 2  ;;  %s4788_s14 = sld [smem:[#allocation32_spill]] }
  0xdc   : > { %s4789_s22 = sld [smem:[#allocation33_spill]]  ;;  %s59_s21 = sadd.s32 1, %s3635_s17 }
  0xdd   : > { %s66_s13 = sadd.s32 1, %s3619_s30  ;;  %p73_p13 = scmp.ne.s32.totalorder %s3619_s30, %s3615_s29 }
  0xde   : > { %s4847_s6 = smov (%p57_p9, %s56_s6), 0  ;;  %s4849_s21 = smov (!%p57_p9, %s59_s21), %s3635_s17 }
  0xdf   : > { %4790 = sst [smem:[#allocation41_spill]] %s4847_s6  ;;  %p4791_p5 = scmp.eq.s32.totalorder %s3639_s18, 0 }
  0xe0   : > { %p79_p2 = scmp.ne.s32.totalorder %s3615_s29, %s3611_s28  ;;  %p61_p10 = scmp.ge.s32.totalorder %s4849_s21, 2 }
  0xe1   : > { %p4049_p0 = por %p4791_p5, %p73_p13  ;;  %p80_p11 = scmp.eq.s32.totalorder %s4033_s25, 0 }
  0xe2   : > { %s89_s4 = ssub.s32 %s3631_s16, %s4847_s6  ;;  %s92_s2 = sadd.s32 1, %s3607_s27 }
  0xe3   : > { %s4851_s21 = smov (%p61_p10, %s4849_s21), 0  ;;  %p4064_p1 = por %p80_p11, %p79_p2 }
  0xe4   : > { %4793 = sst [smem:[#allocation42_spill]] %s4851_s21  ;;  %p90_p3 = scmp.eq.s32.totalorder %s89_s4, 0 }
  0xe5   : > { %s4794_s24 = scalar_select %p4064_p1, 1, 0 }
  0xe6   : > { %s63_s1 = ssub.s32 %s3635_s17, %s4851_s21  ;;  %p105_p12 = scmp.ne.s32.totalorder %s4789_s22, %s4788_s14 }
  0xe7   : > { %p64_p8 = scmp.eq.s32.totalorder %s63_s1, 0  ;;  %p415_p4 = scmp.eq.s32.totalorder %s4033_s25, 3 }
  0xe8   : > { %s4074_s15 = scalar_select %p90_p3, %s3607_s27, %s92_s2  }
  0xe9   : > { %s4077_s0 = scalar_select %p64_p8, %s3619_s30, %s66_s13  }
  0xea   : > { %4795 = sst [smem:[#allocation43_spill]] %s4074_s15  ;;  %p4079_p9 = por %p105_p12, %p80_p11 }
  0xeb   : > { %4796 = sst [smem:[#allocation44_spill]] %s4077_s0  ;;  %p4086_p5 = por %p415_p4, %p73_p13 }
  0xec   : > { %s4797_s8 = scalar_select %p4079_p9, 1, 0 }
  0xed   : > { %s4798_s5 = scalar_select %p4086_p5, 1, 0 }
  0xee   : > { %p421_p10 = scmp.eq.s32.totalorder %s2581_s10, 3  ;;  %s441_s14 = sand.u32 1, %s3619_s30  }
  0xef   : > { %s2584_s22 = sshll.u32 %s441_s14, 4  ;;  %s2661_s2 = sshll.u32 %s3635_s17, 8 }
  0xf0   : > { %p4094_p1 = por %p421_p10, %p79_p2  ;;  %s445_s13 = scalar_lea.vmem [#allocation2], %s2584_s22 }
  0xf1   : > { %s452_s1 = sshll.u32 %s445_s13, 4  ;;  %s4801_s11 = sld [smem:[#allocation45_spill]]  ;;  %s4104_s1 = int_to_ptr.vmem [resolvable:$true] %s452_s1 }
  0xf2   : > { %s4799_s4 = scalar_select %p4094_p1, 1, 0 }
  0xf3   : > { %p4802_p13 = scmp.lt.s32.totalorder %s3639_s18, 4  ;;  %s4804_s13 = sld [smem:[#allocation47_spill]] }
  0xf4   : > { %4800 = sst [smem:[#allocation32_spill]] %s4799_s4  ;;  %s4120_s9 = scalar_lea.sflag [#allocation3], %s441_s14 }
  0xf5   : > { %p4110_p2 = pnand %p4802_p13, %p4049_p0 }
  0xf7   : > { %s4102_s21 = scalar_lea.hbm %s4801_s11, %s2661_s2  ;;  %p3285_p3 = pneg %p4110_p2 }
  0xf8   : > { %s3283_s2 = scalar_lea.hbm %s4102_s21, 256  ;;  %s3288_s16 = scalar_lea.hbm %s4801_s11, 512 }
  0xf9   : > { %s4118_s7 = scalar_lea.hbm %s4804_s13, %s3875_s26  ;;  %p3284_p11 = scmp.ne.s32.totalorder %s4102_s21, %s3283_s2 }
  0xfa   : > { %p3289_p8 = scmp.lt.u32.totalorder %s4102_s21, %s4801_s11  ;;  %p3290_p4 = scmp.lt.u32.totalorder %s3288_s16, %s3283_s2 }
  0xfb   : > { %p3286_p12 = pnand %p3285_p3, %p3284_p11  ;;  %p3292_p13 = scmp.lt.u32.totalorder %s3283_s2, %s4102_s21 }
  0xfc   : > { %p3291_p10 = por %p3290_p4, %p3289_p8 }
  0xfd   : > { %p3287_p0 = pneg %p3286_p12 }
  0xfe   : > { %p3293_p1 = por %p3292_p13, %p3291_p10 }
 0x100   : > { %p3294_p5 = pnand %p3293_p1, %p3287_p0 }
 0x102   : > { %3297 = shalt.err (!%p3294_p5)
}
 0x103   : > { %s3298_s14 = scalar_lea.vmem %s4104_s1, 256  ;;  %s3649_s17 = smov [#allocation2]  }
 0x104   : > { %p3299_p11 = scmp.ne.s32.totalorder %s4104_s1, %s3298_s14  ;;  %s3303_s22 = sshll.u32 %s3649_s17, 4  ;;  %s3304_s22 = int_to_ptr.vmem [resolvable:$false] %s3303_s22 }
 0x105   : > { %s3305_s0 = scalar_lea.vmem %s3304_s22, 512  ;;  %p3306_p7 = scmp.lt.s32.totalorder %s4104_s1, %s3304_s22 }
 0x106   : > { %p3301_p12 = pnand %p3299_p11, %p3285_p3  ;;  %p3307_p8 = scmp.lt.s32.totalorder %s3305_s0, %s3298_s14 }
 0x108   : > { %p3302_p9 = pneg %p3301_p12  ;;  %p3308_p4 = por %p3307_p8, %p3306_p7 }
 0x10a   : > { %p3309_p10 = pnand %p3308_p4, %p3302_p9 }
 0x10c   : > { %3312 = shalt.err (!%p3309_p10)
}
 0x10d   : > { %s3650_s16 = smov 128   ;;  %s3651_s2 = smov 8  }
 0x10e   : > { %2888 = dma.hbm_to_vmem [thread:$0]  (!%p4110_p2), %s4102_s21, 256, %s4104_s1, %s4120_s9, %s3650_s16, %s3650_s16, %s3651_s2  }
 0x10f   : > { %s486_s3 = scalar_lea.vmem [#allocation7], %s3805_s20  ;;  %s4805_s22 = sld [smem:[#allocation49_spill]] }
 0x110   : > { %s493_s6 = sshll.u32 %s486_s3, 4  ;;  %s3313_s11 = scalar_lea.hbm %s4118_s7, 16  ;;  %s494_s6 = int_to_ptr.vmem [resolvable:$true] %s493_s6 }
 0x111   : > { %p3314_p7 = scmp.ne.s32.totalorder %s4118_s7, %s3313_s11  ;;  %s3318_s27 = scalar_lea.hbm %s4804_s13, 32 }
 0x112   : > { %p3319_p5 = scmp.lt.u32.totalorder %s4118_s7, %s4804_s13  ;;  %p3320_p2 = scmp.lt.u32.totalorder %s3318_s27, %s3313_s11 }
 0x113   : > { %p3316_p1 = pnand %p3314_p7, %p3833_p6  ;;  %p3322_p0 = scmp.lt.u32.totalorder %s3313_s11, %s4118_s7 }
 0x114   : > { %p3321_p3 = por %p3320_p2, %p3319_p5 }
 0x115   : > { %s4153_s0 = scalar_lea.hbm %s4805_s22, %s3875_s26  ;;  %p3317_p9 = pneg %p3316_p1 }
 0x116   : > { %p3323_p13 = por %p3322_p0, %p3321_p3 }
 0x118   : > { %p3324_p11 = pnand %p3323_p13, %p3317_p9 }
 0x11a   : > { %3327 = shalt.err (!%p3324_p11)
}
 0x11b   : > { %s3328_s21 = scalar_lea.vmem %s494_s6, 16  ;;  %s3652_s1 = smov [#allocation7]  }
 0x11c   : > { %p3329_p12 = scmp.ne.s32.totalorder %s494_s6, %s3328_s21  ;;  %s3333_s9 = sshll.u32 %s3652_s1, 4  ;;  %s3334_s9 = int_to_ptr.vmem [resolvable:$false] %s3333_s9 }
 0x11d   : > { %s3335_s30 = scalar_lea.vmem %s3334_s9, 32  ;;  %p3336_p10 = scmp.lt.s32.totalorder %s494_s6, %s3334_s9 }
 0x11e   : > { %p3331_p8 = pnand %p3329_p12, %p3833_p6  ;;  %p3337_p7 = scmp.lt.s32.totalorder %s3335_s30, %s3328_s21 }
 0x120   : > { %p3332_p4 = pneg %p3331_p8  ;;  %p3338_p1 = por %p3337_p7, %p3336_p10 }
 0x122   : > { %p3339_p2 = pnand %p3338_p1, %p3332_p4 }
 0x124   : > { %3342 = shalt.err (!%p3339_p2)
}
 0x125   : > { %p4806_p5 = scmp.ne.s32.totalorder %s4773_s12, 0  ;;  %s4807_s11 = scalar_lea.sflag [#allocation6], %s3802_s19 }
 0x126   : > { %s524_s27 = scalar_lea.vmem [#allocation10], %s3805_s20  ;;  %s4808_s2 = sld [smem:[#allocation51_spill]] }
 0x127   : > { %2894 = dma.hbm_to_vmem [thread:$0]  (!%p4806_p5), %s4118_s7, 16, %s494_s6, %s4807_s11  }
 0x128   : > { %s531_s15 = sshll.u32 %s524_s27, 4  ;;  %s3343_s14 = scalar_lea.hbm %s4153_s0, 16  ;;  %s532_s15 = int_to_ptr.vmem [resolvable:$true] %s531_s15 }
 0x129   : > { %p3344_p9 = scmp.ne.s32.totalorder %s4153_s0, %s3343_s14  ;;  %s3348_s21 = scalar_lea.hbm %s4805_s22, 32 }
 0x12a   : > { %p3349_p13 = scmp.lt.u32.totalorder %s4153_s0, %s4805_s22  ;;  %p3350_p11 = scmp.lt.u32.totalorder %s3348_s21, %s3343_s14 }
 0x12b   : > { %p3346_p3 = pnand %p3344_p9, %p3833_p6  ;;  %p3352_p8 = scmp.lt.u32.totalorder %s3343_s14, %s4153_s0 }
 0x12c   : > { %s4179_s3 = scalar_lea.hbm %s4808_s2, %s3875_s26  ;;  %p3351_p12 = por %p3350_p11, %p3349_p13 }
 0x12d   : > { %p3347_p0 = pneg %p3346_p3 }
 0x12e   : > { %p3353_p4 = por %p3352_p8, %p3351_p12 }
 0x130   : > { %p3354_p10 = pnand %p3353_p4, %p3347_p0 }
 0x132   : > { %3357 = shalt.err (!%p3354_p10)
}
 0x133   : > { %s3358_s7 = scalar_lea.vmem %s532_s15, 16  ;;  %s3653_s6 = smov [#allocation10]  }
 0x134   : > { %p3359_p7 = scmp.ne.s32.totalorder %s532_s15, %s3358_s7  ;;  %s3363_s30 = sshll.u32 %s3653_s6, 4  ;;  %s3364_s30 = int_to_ptr.vmem [resolvable:$false] %s3363_s30 }
 0x135   : > { %s3365_s11 = scalar_lea.vmem %s3364_s30, 32  ;;  %p3366_p9 = scmp.lt.s32.totalorder %s532_s15, %s3364_s30 }
 0x136   : > { %p3361_p1 = pnand %p3359_p7, %p3833_p6  ;;  %p3367_p3 = scmp.lt.s32.totalorder %s3365_s11, %s3358_s7 }
 0x138   : > { %p3362_p2 = pneg %p3361_p1  ;;  %p3368_p5 = por %p3367_p3, %p3366_p9 }
 0x13a   : > { %p3369_p11 = pnand %p3368_p5, %p3362_p2 }
 0x13c   : > { %3372 = shalt.err (!%p3369_p11)
}
 0x13d   : > { %p4809_p13 = scmp.ne.s32.totalorder %s4773_s12, 0  ;;  %s4810_s27 = scalar_lea.sflag [#allocation9], %s3802_s19 }
 0x13e   : > { %s558_s4 = scalar_lea.vmem [#allocation13], %s3805_s20  ;;  %s4811_s10 = sld [smem:[#allocation53_spill]] }
 0x13f   : > { %2900 = dma.hbm_to_vmem [thread:$0]  (!%p4809_p13), %s4153_s0, 16, %s532_s15, %s4810_s27  }
 0x140   : > { %s565_s16 = sshll.u32 %s558_s4, 4  ;;  %s3373_s1 = scalar_lea.hbm %s4179_s3, 16  ;;  %s566_s16 = int_to_ptr.vmem [resolvable:$true] %s565_s16 }
 0x141   : > { %p3374_p5 = scmp.ne.s32.totalorder %s4179_s3, %s3373_s1  ;;  %s3378_s6 = scalar_lea.hbm %s4808_s2, 32 }
 0x142   : > { %p3379_p8 = scmp.lt.u32.totalorder %s4179_s3, %s4808_s2  ;;  %p3380_p4 = scmp.lt.u32.totalorder %s3378_s6, %s3373_s1 }
 0x143   : > { %p3376_p0 = pnand %p3374_p5, %p3833_p6  ;;  %p3382_p7 = scmp.lt.u32.totalorder %s3373_s1, %s4179_s3 }
 0x144   : > { %s4205_s21 = scalar_lea.hbm %s4811_s10, %s3875_s26  ;;  %p3381_p10 = por %p3380_p4, %p3379_p8 }
 0x145   : > { %p3377_p12 = pneg %p3376_p0 }
 0x146   : > { %p3383_p1 = por %p3382_p7, %p3381_p10 }
 0x148   : > { %p3384_p2 = pnand %p3383_p1, %p3377_p12 }
 0x14a   : > { %3387 = shalt.err (!%p3384_p2)
}
 0x14b   : > { %s3388_s0 = scalar_lea.vmem %s566_s16, 16  ;;  %s3654_s15 = smov [#allocation13]  }
 0x14c   : > { %p3389_p9 = scmp.ne.s32.totalorder %s566_s16, %s3388_s0  ;;  %s3393_s27 = sshll.u32 %s3654_s15, 4  ;;  %s3394_s27 = int_to_ptr.vmem [resolvable:$false] %s3393_s27 }
 0x14d   : > { %s3395_s4 = scalar_lea.vmem %s3394_s27, 32  ;;  %p3396_p5 = scmp.lt.s32.totalorder %s566_s16, %s3394_s27 }
 0x14e   : > { %p3391_p3 = pnand %p3389_p9, %p3833_p6  ;;  %p3397_p0 = scmp.lt.s32.totalorder %s3395_s4, %s3388_s0 }
 0x150   : > { %p3392_p11 = pneg %p3391_p3  ;;  %p3398_p13 = por %p3397_p0, %p3396_p5 }
 0x152   : > { %p3399_p4 = pnand %p3398_p13, %p3392_p11 }
 0x154   : > { %3402 = shalt.err (!%p3399_p4)
}
 0x155   : > { %p4812_p8 = scmp.ne.s32.totalorder %s4773_s12, 0  ;;  %s4813_s14 = scalar_lea.sflag [#allocation12], %s3802_s19 }
 0x156   : > { %s596_s17 = scalar_lea.vmem [#allocation16], %s3805_s20  ;;  %s4814_s6 = sld [smem:[#allocation55_spill]] }
 0x157   : > { %2906 = dma.hbm_to_vmem [thread:$0]  (!%p4812_p8), %s4179_s3, 16, %s566_s16, %s4813_s14  }
 0x158   : > { %s603_s1 = sshll.u32 %s596_s17, 4  ;;  %s3403_s11 = scalar_lea.hbm %s4205_s21, 16  ;;  %s604_s1 = int_to_ptr.vmem [resolvable:$true] %s603_s1 }
 0x159   : > { %p3404_p13 = scmp.ne.s32.totalorder %s4205_s21, %s3403_s11  ;;  %s3408_s27 = scalar_lea.hbm %s4811_s10, 32 }
 0x15a   : > { %p3409_p7 = scmp.lt.u32.totalorder %s4205_s21, %s4811_s10  ;;  %p3410_p1 = scmp.lt.u32.totalorder %s3408_s27, %s3403_s11 }
 0x15b   : > { %p3406_p12 = pnand %p3404_p13, %p3833_p6  ;;  %p3412_p9 = scmp.lt.u32.totalorder %s3403_s11, %s4205_s21 }
 0x15c   : > { %s4231_s30 = scalar_lea.hbm %s4814_s6, %s3875_s26  ;;  %p3411_p2 = por %p3410_p1, %p3409_p7 }
 0x15d   : > { %p3407_p10 = pneg %p3406_p12 }
 0x15e   : > { %p3413_p3 = por %p3412_p9, %p3411_p2 }
 0x160   : > { %p3414_p11 = pnand %p3413_p3, %p3407_p10 }
 0x162   : > { %3417 = shalt.err (!%p3414_p11)
}
 0x163   : > { %s3418_s3 = scalar_lea.vmem %s604_s1, 16  ;;  %s3655_s16 = smov [#allocation16]  }
 0x164   : > { %p3419_p5 = scmp.ne.s32.totalorder %s604_s1, %s3418_s3  ;;  %s3423_s14 = sshll.u32 %s3655_s16, 4  ;;  %s3424_s14 = int_to_ptr.vmem [resolvable:$false] %s3423_s14 }
 0x165   : > { %s3425_s17 = scalar_lea.vmem %s3424_s14, 32  ;;  %p3426_p13 = scmp.lt.s32.totalorder %s604_s1, %s3424_s14 }
 0x166   : > { %p3421_p0 = pnand %p3419_p5, %p3833_p6  ;;  %p3427_p12 = scmp.lt.s32.totalorder %s3425_s17, %s3418_s3 }
 0x168   : > { %p3422_p4 = pneg %p3421_p0  ;;  %p3428_p8 = por %p3427_p12, %p3426_p13 }
 0x16a   : > { %p3429_p1 = pnand %p3428_p8, %p3422_p4 }
 0x16c   : > { %3432 = shalt.err (!%p3429_p1)
}
 0x16d   : > { %p4815_p7 = scmp.ne.s32.totalorder %s4773_s12, 0  ;;  %s4816_s2 = scalar_lea.sflag [#allocation15], %s3802_s19 }
 0x16e   : > { %s634_s9 = scalar_lea.vmem [#allocation19], %s3805_s20  ;;  %s4817_s15 = sld [smem:[#allocation57_spill]] }
 0x16f   : > { %2912 = dma.hbm_to_vmem [thread:$0]  (!%p4815_p7), %s4205_s21, 16, %s604_s1, %s4816_s2  }
 0x170   : > { %s641_s7 = sshll.u32 %s634_s9, 4  ;;  %s3433_s3 = scalar_lea.hbm %s4231_s30, 16  ;;  %s642_s7 = int_to_ptr.vmem [resolvable:$true] %s641_s7 }
 0x171   : > { %p3434_p8 = scmp.ne.s32.totalorder %s4231_s30, %s3433_s3  ;;  %s3438_s17 = scalar_lea.hbm %s4814_s6, 32 }
 0x172   : > { %p3439_p9 = scmp.lt.u32.totalorder %s4231_s30, %s4814_s6  ;;  %p3440_p3 = scmp.lt.u32.totalorder %s3438_s17, %s3433_s3 }
 0x173   : > { %p3436_p10 = pnand %p3434_p8, %p3833_p6  ;;  %p3442_p5 = scmp.lt.u32.totalorder %s3433_s3, %s4231_s30 }
 0x174   : > { %s4818_s4 = smov %s4817_s15  ;;  %s4257_s27 = scalar_lea.hbm %s4817_s15, %s3875_s26 }
 0x175   : > { %p3437_p2 = pneg %p3436_p10  ;;  %p3441_p11 = por %p3440_p3, %p3439_p9 }
 0x177   : > { %p3443_p0 = por %p3442_p5, %p3441_p11 }
 0x179   : > { %p3444_p4 = pnand %p3443_p0, %p3437_p2 }
 0x17b   : > { %3447 = shalt.err (!%p3444_p4)
}
 0x17c   : > { %s3448_s26 = scalar_lea.vmem %s642_s7, 16  ;;  %s3656_s21 = smov [#allocation19]  }
 0x17d   : > { %p3449_p13 = scmp.ne.s32.totalorder %s642_s7, %s3448_s26  ;;  %s3453_s1 = sshll.u32 %s3656_s21, 4  ;;  %s3454_s1 = int_to_ptr.vmem [resolvable:$false] %s3453_s1 }
 0x17e   : > { %s3455_s2 = scalar_lea.vmem %s3454_s1, 32  ;;  %p3456_p8 = scmp.lt.s32.totalorder %s642_s7, %s3454_s1 }
 0x17f   : > { %p3451_p12 = pnand %p3449_p13, %p3833_p6  ;;  %p3457_p10 = scmp.lt.s32.totalorder %s3455_s2, %s3448_s26 }
 0x181   : > { %p3452_p1 = pneg %p3451_p12  ;;  %p3458_p7 = por %p3457_p10, %p3456_p8 }
 0x183   : > { %p3459_p3 = pnand %p3458_p7, %p3452_p1 }
 0x185   : > { %3462 = shalt.err (!%p3459_p3)
}
 0x186   : > { %p4819_p9 = scmp.ne.s32.totalorder %s4773_s12, 0  ;;  %s4820_s13 = scalar_lea.sflag [#allocation18], %s3802_s19 }
 0x187   : > { %s668_s10 = scalar_lea.vmem [#allocation22], %s3805_s20  ;;  %s3463_s11 = scalar_lea.hbm %s4257_s27, 16 }
 0x188   : > { %2918 = dma.hbm_to_vmem [thread:$0]  (!%p4819_p9), %s4231_s30, 16, %s642_s7, %s4820_s13  }
 0x189   : > { %s675_s9 = sshll.u32 %s668_s10, 4  ;;  %p3464_p2 = scmp.ne.s32.totalorder %s4257_s27, %s3463_s11  ;;  %s676_s9 = int_to_ptr.vmem [resolvable:$true] %s675_s9 }
 0x18a   : > { %s3468_s3 = scalar_lea.hbm %s4818_s4, 32  ;;  %p3469_p5 = scmp.lt.u32.totalorder %s4257_s27, %s4818_s4 }
 0x18b   : > { %p3466_p7 = pnand %p3464_p2, %p3833_p6  ;;  %p3470_p0 = scmp.lt.u32.totalorder %s3468_s3, %s3463_s11 }
 0x18c   : > { %p3472_p13 = scmp.lt.u32.totalorder %s3463_s11, %s4257_s27 }
 0x18d   : > { %p3467_p11 = pneg %p3466_p7  ;;  %p3471_p4 = por %p3470_p0, %p3469_p5 }
 0x18f   : > { %p3473_p12 = por %p3472_p13, %p3471_p4 }
 0x191   : > { %p3474_p1 = pnand %p3473_p12, %p3467_p11 }
 0x193   : > { %3477 = shalt.err (!%p3474_p1)
}
 0x194   : > { %s3478_s20 = scalar_lea.vmem %s676_s9, 16  ;;  %s3657_s30 = smov [#allocation22]  }
 0x195   : > { %p3479_p8 = scmp.ne.s32.totalorder %s676_s9, %s3478_s20  ;;  %s3483_s7 = sshll.u32 %s3657_s30, 4  ;;  %s3484_s7 = int_to_ptr.vmem [resolvable:$false] %s3483_s7 }
 0x196   : > { %s3485_s17 = scalar_lea.vmem %s3484_s7, 32  ;;  %p3486_p2 = scmp.lt.s32.totalorder %s676_s9, %s3484_s7 }
 0x197   : > { %p3481_p10 = pnand %p3479_p8, %p3833_p6  ;;  %p3487_p7 = scmp.lt.s32.totalorder %s3485_s17, %s3478_s20 }
 0x199   : > { %p3482_p3 = pneg %p3481_p10  ;;  %p3488_p9 = por %p3487_p7, %p3486_p2 }
 0x19b   : > { %p3489_p0 = pnand %p3488_p9, %p3482_p3 }
 0x19d   : > { %3492 = shalt.err (!%p3489_p0)
}
 0x19e   : > { %p4821_p5 = scmp.ne.s32.totalorder %s4773_s12, 0  ;;  %s4822_s26 = scalar_lea.sflag [#allocation21], %s3802_s19 }
 0x19f   : > { %s4823_s21 = sld [smem:[#allocation40_spill]] }
 0x1a0   : > { %2924 = dma.hbm_to_vmem [thread:$0]  (!%p4821_p5), %s4257_s27, 16, %s676_s9, %s4822_s26  }
 0x1a5   : > { %p4824_p11 = scmp.ne.s32.totalorder %s4823_s21, 0 }
 0x1a6   : > { %s4301_s23 = sand.u32 (!%p4824_p11), 1, %s3615_s29   ;;  %p4825_p6 = scmp.ne.s32.totalorder (!%p4824_p11), %s4794_s24, 0 }
 0x1a7   : > { %684 = sbr.rel (%p4824_p11) target bundleno = 3650 (0xe42), region = 72  ;;  %s2608_s1 = sshll.u32 (!%p4824_p11), %s4301_s23, 4 }
 0x1a8   : > { %s687_s2 = scalar_lea.sflag (!%p4824_p11), [#allocation3], %s4301_s23  ;;  %s4307_s13 = scalar_lea.vmem (!%p4824_p11), [#allocation2], %s2608_s1 }
 0x1ae   : > { %3566 = dma.done.wait (%p4825_p6), %s687_s2, 256  }
 0x1af   : > { %3568 = vsyncadd (%p4825_p6), %s687_s2, 4294967040  ;;  %s4826_s12 = sld [smem:[#allocation33_spill]]  ;;  %s4314_s19 = sand.u32 1, %s4033_s25  }
 0x1b0   : > { %s696_s9 = scalar_lea.sflag [#allocation6], %s4314_s19  ;;  %p4827_p9 = scmp.ne.s32.totalorder %s4797_s8, 0 }
 0x1b5   : > { %s4317_s27 = sand.u32 1, %s4826_s12  }
 0x1b6   : > { %s4320_s10 = sshll.u32 %s4317_s27, 4 }
 0x1b7   : > { %s699_s11 = scalar_lea.vmem [#allocation5], %s4320_s10 }
 0x1b8   : > { %3570 = dma.done.wait (%p4827_p9), %s696_s9, 272  }
 0x1b9   : > { %3572 = vsyncadd (%p4827_p9), %s696_s9, 4294967024  ;;  %s707_s25 = scalar_lea.vmem [#allocation7], %s4317_s27  ;;  %s713_s24 = scalar_lea.sflag [#allocation9], %s4314_s19 }
 0x1ba   : > { %s716_s0 = scalar_lea.vmem [#allocation8], %s4320_s10 }
 0x1bb   : > { %3574 = dma.done.wait (%p4827_p9), %s713_s24, 272  }
 0x1bc   : > { %3576 = vsyncadd (%p4827_p9), %s713_s24, 4294967024  ;;  %s724_s15 = scalar_lea.vmem [#allocation10], %s4317_s27  ;;  %s730_s3 = scalar_lea.sflag [#allocation12], %s4314_s19 }
 0x1bd   : > { %s732_s16 = scalar_lea.vmem [#allocation11], %s4317_s27 }
 0x1be   : > { %3578 = dma.done.wait (%p4827_p9), %s730_s3, 32  }
 0x1bf   : > { %3580 = vsyncadd (%p4827_p9), %s730_s3, 4294967264  ;;  %s740_s14 = scalar_lea.vmem [#allocation13], %s4317_s27  ;;  %s746_s20 = scalar_lea.sflag [#allocation15], %s4314_s19 }
 0x1c0   : > { %s749_s30 = scalar_lea.vmem [#allocation14], %s4320_s10 }
 0x1c1   : > { %3582 = dma.done.wait (%p4827_p9), %s746_s20, 272  }
 0x1c2   : > { %3584 = vsyncadd (%p4827_p9), %s746_s20, 4294967024  ;;  %s2612_s7 = sshll.u32 %s4317_s27, 6  ;;  %s757_s17 = scalar_lea.vmem [#allocation16], %s4317_s27 }
 0x1c3   : > { %s763_s26 = scalar_lea.sflag [#allocation18], %s4314_s19  ;;  %s4352_s21 = scalar_lea.vmem [#allocation17], %s2612_s7 }
 0x1c4   : > { %3586 = dma.done.wait (%p4827_p9), %s763_s26, 1040  }
 0x1c5   : > { %3588 = vsyncadd (%p4827_p9), %s763_s26, 4294966256  ;;  %s774_s2 = scalar_lea.vmem [#allocation19], %s4317_s27  ;;  %s780_s12 = scalar_lea.sflag [#allocation21], %s4314_s19 }
 0x1c6   : > { %s782_s9 = scalar_lea.vmem [#allocation20], %s4317_s27 }
 0x1c7   : > { %3590 = dma.done.wait (%p4827_p9), %s780_s12, 32  }
 0x1c8   : > { %3592 = vsyncadd (%p4827_p9), %s780_s12, 4294967264  ;;  %s790_s24 = scalar_lea.vmem [#allocation22], %s4317_s27  ;;  %s4368_s3 = scalar_lea.vmem [#allocation23], %s2608_s1 }
 0x1c9   : > { %s4828_s20 = sld [smem:[#allocation36_spill]] }
 0x1cf   : > { %p2614_p4 = scmp.ne.s32.totalorder %s4828_s20, 0 }
 0x1d0   : > { %v892_v0 = vld [vmem:[%s4307_s13] sm:$0xff] (!%p2614_p4)  ;;  %vm894_vm0 = vcmask (!%p2614_p4), 261120   ;;  %v893_v1 = vld [vmem:[%s4307_s13 + $0x8] sm:$0xff] (!%p2614_p4) }
 0x1d1   : > { %891 = sbr.rel (%p2614_p4) target bundleno = 472 (0x1d8), region = 128  ;;  %895 = vst.msk [vmem:[%s4368_s3] sm:$0xff] (!%p2614_p4), %vm894_vm0, %v892_v0  ;;  %896 = vst.msk [vmem:[%s4368_s3 + $0x8] sm:$0xff] (!%p2614_p4), %vm894_vm0, %v893_v1 }
 0x1d8 PF: > { %v3049_v2 = vld [vmem:[%s699_s11] sm:$0xff]   ;;  %v3658_v3 = vmov 0.0   ;;  %v3050_v4 = vld [vmem:[%s699_s11 + $0x8] sm:$0xff]   ;;  %vm3659_vm1 = vmmov 0   ;;  %v4384_v5 = vld [vmem:[%s4368_s3] sm:$0xff]  ;;  %vm923_vm2 = vcmask 261120  }
 0x1d9   : > { %2717 = vmatprep.subr.bf16.mxu0 %v3658_v3  ;;  %2737 = vmatprep.subr.bf16.mxu1 %v3658_v3  ;;  %v4387_v6 = vld [vmem:[%s4368_s3 + $0x8] sm:$0xff]  ;;  %v2615_v8 = vld [vmem:[%s707_s25] ss:$0 sm:$0xff]  ;;  %s3660_s8 = smov 104   ;;  %s3661_s1 = smov 120   ;;  %vm985_vm3 = vcmask 64512  }
 0x1da   : > { %2718 = vmatpush3.bf16.msra.mxu0 %v3049_v2  ;;  %2721 = vmatprep.mubr.msk.bf16.mxu0 %vm3659_vm1, %v3658_v3  ;;  %v899_v7 = vpack.c.bf16 %v4387_v6, %v4384_v5  ;;  %s3662_s13 = smov 112   ;;  %s3663_s19 = smov 96   ;;  %vm1232_vm4 = vcmask 1043456   ;;  %vm1433_vm5 = vcmask 130048   ;;  %vm1435_vm6 = vcmask 195584  }
 0x1db   : > { %2719 = vmatprep.subr.bf16.mxu0 %v3658_v3  ;;  %2739 = vmatprep.mubr.msk.bf16.mxu1 %vm3659_vm1, %v3658_v3  ;;  %s3664_s11 = smov 64   ;;  %s3665_s25 = smov 8  }
 0x1dc   : > { %s3666_s7 = smov 16   ;;  %s4829_s10 = sld [smem:[#allocation37_spill]] }
 0x1dd   : > { %s2249_s27 = scalar_lea.sflag [#allocation4], %s4301_s23  ;;  %p4832_p12 = scmp.ne.s32.totalorder %s4798_s5, 0 }
 0x1de   : > { %2720 = vmatpush3.bf16.msra.mxu0 %v3050_v4  ;;  %s3668_s12 = smov [#allocation23]  }
 0x1df   : > { %2725 = vmatprep.subr.bf16.mxu0 %v3658_v3 }
 0x1e1   : > { %2722 = vmatmul.mubr.msk.bf16.vlgmr.msra.gmra.mrb[0].mxu0 %vm923_vm2, %v899_v7 }
 0x1e2   : > { %2727 = vmatprep.mubr.msk.bf16.mxu0 %vm3659_vm1, %v3658_v3 }
 0x2b4   : > { %v961_v9 = vpop.f32.mrb[0].mxu0 }
 0x2b5   : > { %v962_v10 = vadd.f32 %v2615_v8, %v961_v9  ;;  %v2723_v11 = vpop.f32.mrb[1].mxu0 }
 0x2b6   : > { %v964_v12 = vpop.f32.mrb[2].mxu0 }
 0x2b7   : > { %v4400_v13 = vadd.f32 %v2615_v8, %v964_v12  ;;  %975 = vrot.lane.b32.xlu1 %v962_v10, %s3660_s8  ;;  %969 = vrot.lane.b32.xlu0 %v962_v10, %s3661_s1  ;;  %v2724_v14 = vpop.f32.mrb[3].mxu0  ;;  %v4404_v15 = vpack.c.bf16 %v962_v10, %v962_v10 }
 0x2bb   : > { %972 = vrot.lane.b32.xlu0 %v962_v10, %s3662_s13  ;;  %983 = vrot.lane.b32.xlu1 %v4404_v15, %s3663_s19 }
 0x329   : > { %v976_v16 = vpop.permute.xlu1 %975  ;;  %v970_v17 = vpop.permute.xlu0 %969 }
 0x32a   : > { %v979_v18 = vpack.c.bf16 %v970_v17, %v970_v17  ;;  %v4410_v21 = vpack.c.bf16 %v976_v16, %v976_v16 }
 0x32c   : > { %1033 = vrot.lane.b32.xlu0 %v979_v18, %s3663_s19 }
 0x32d   : > { %v973_v19 = vpop.permute.xlu0 %972  ;;  %v984_v20 = vpop.permute.xlu1 %983 }
 0x32e   : > { %v980_v22 = vpack.c.bf16 %v973_v19, %v973_v19  ;;  %v990_v23 = vsel %vm985_vm3, %v984_v20, 0  ;;  %v4471_v19 = vpack.c.bf16 %v4400_v13, %v4400_v13 }
 0x32f   : > { %2726 = vmatpush3.bf16.xpose.msra.mxu0 %v990_v23 }
 0x330   : > { %1131 = vrot.lane.b32.xlu0 %v4410_v21, %s3663_s19  ;;  %1082 = vrot.lane.b32.xlu1 %v980_v22, %s3663_s19 }
 0x331   : > { %2731 = vmatprep.subr.bf16.mxu0 %v3658_v3 }
 0x336   : > { %2728 = vmatmul.mubr.msk.bf16.vlgmr.msra.gmra.mrb[4].mxu0 %vm985_vm3, %v4404_v15 }
 0x337   : > { %2733 = vmatprep.mubr.msk.bf16.mxu0 %vm3659_vm1, %v3658_v3 }
 0x39e   : > { %v1034_v24 = vpop.permute.xlu0 %1033 }
 0x39f   : > { %v1039_v25 = vsel %vm985_vm3, %v1034_v24, 0 }
 0x3a0   : > { %2732 = vmatpush3.bf16.xpose.msra.mxu0 %v1039_v25 }
 0x3a1   : > { %2743 = vmatprep.subr.bf16.mxu0 %v3658_v3 }
 0x3a2   : > { %v1083_v26 = vpop.permute.xlu1 %1082  ;;  %v1132_v28 = vpop.permute.xlu0 %1131 }
 0x3a3   : > { %v1088_v27 = vsel %vm985_vm3, %v1083_v26, 0  ;;  %v1137_v29 = vsel %vm985_vm3, %v1132_v28, 0 }
 0x3a4   : > { %2738 = vmatpush3.bf16.xpose.msra.mxu1 %v1088_v27 }
 0x3a5   : > { %2749 = vmatprep.subr.bf16.mxu1 %v3658_v3 }
 0x3a7   : > { %2734 = vmatmul.mubr.msk.bf16.vlgmr.msra.gmra.mrb[8].mxu0 %vm985_vm3, %v979_v18 }
 0x3a8   : > { %2744 = vmatpush3.bf16.xpose.msra.mxu0 %v1137_v29  ;;  %2745 = vmatprep.mubr.msk.bf16.mxu0 %vm3659_vm1, %v3658_v3 }
 0x3a9   : > { %2755 = vmatprep.subr.bf16.mxu0 %v3658_v3 }
 0x3ab   : > { %2740 = vmatmul.mubr.msk.bf16.vlgmr.msra.gmra.mrb[0].mxu1 %vm985_vm3, %v980_v22 }
 0x3ac   : > { %2751 = vmatprep.mubr.msk.bf16.mxu1 %vm3659_vm1, %v3658_v3 }
 0x3af   : > { %2746 = vmatmul.mubr.msk.bf16.vlgmr.msra.gmra.mrb[12].mxu0 %vm985_vm3, %v4410_v21 }
 0x3b0   : > { %2757 = vmatprep.mubr.msk.bf16.mxu0 %vm3659_vm1, %v3658_v3 }
 0x409   : > { %v1026_v30 = vpop.f32.mrb[4].mxu0 }
 0x40a   : > { %v2729_v31 = vpop.f32.mrb[5].mxu0  ;;  %v1179_v32 = vsel %vm985_vm3, %v1026_v30, -inf }
 0x40b   : > { %1180 = vmax.xlane.f32.xlu1 %v1179_v32  ;;  %v1029_v33 = vpop.f32.mrb[6].mxu0 }
 0x40c   : > { %v2730_v34 = vpop.f32.mrb[7].mxu0 }
 0x47a   : > { %v1075_v35 = vpop.f32.mrb[8].mxu0 }
 0x47b   : > { %v2735_v36 = vpop.f32.mrb[9].mxu0  ;;  %v1182_v37 = vsel %vm985_vm3, %v1075_v35, -inf }
 0x47c   : > { %1183 = vmax.xlane.f32.xlu0 %v1182_v37  ;;  %v1078_v38 = vpop.f32.mrb[10].mxu0 }
 0x47d   : > { %v2736_v39 = vpop.f32.mrb[11].mxu0 }
 0x47e   : > { %v1124_v40 = vpop.f32.mrb[0].mxu1 }
 0x47f   : > { %v2741_v41 = vpop.f32.mrb[1].mxu1  ;;  %v1185_v42 = vsel %vm985_vm3, %v1124_v40, -inf }
 0x480   : > { %v1127_v43 = vpop.f32.mrb[2].mxu1  ;;  %1186 = vmax.xlane.f32.xlu0 %v1185_v42 }
 0x481   : > { %v2742_v44 = vpop.f32.mrb[3].mxu1 }
 0x482   : > { %v1173_v45 = vpop.f32.mrb[12].mxu0 }
 0x483   : > { %v2747_v46 = vpop.f32.mrb[13].mxu0  ;;  %v1188_v47 = vsel %vm985_vm3, %v1173_v45, -inf }
 0x484   : > { %1189 = vmax.xlane.f32.xlu1 %v1188_v47  ;;  %v1176_v48 = vpop.f32.mrb[14].mxu0 }
 0x485   : > { %v2748_v49 = vpop.f32.mrb[15].mxu0 }
 0x495   : > { %1441 = vrot.lane.b32.xlu1 %v4400_v13, %s3662_s13 }
 0x496   : > { %1438 = vrot.lane.b32.xlu0 %v4400_v13, %s3661_s1 }
 0x498   : > { %v1181_v50 = vpop.xlane.xlu1 %1180 }
 0x499   : > { %1444 = vrot.lane.b32.xlu1 %v4400_v13, %s3660_s8  ;;  %v1191_v51 = vsub.f32 %v1026_v30, %v1181_v50 }
 0x49a   : > { %1276 = vrot.lane.b32.xlu0 %v979_v18, %s3664_s11 }
 0x49b   : > { %v1195_v52 = vmul.f32 1.442695, %v1191_v51 }
 0x49d   : > { %1227 = vrot.lane.b32.xlu1 %v4404_v15, %s3664_s11  ;;  %3063 = vpow2.f32 %v1195_v52 }
 0x4a1   : > { %1324 = vrot.lane.b32.xlu1 %v980_v22, %s3664_s11 }
 0x4a7   : > { %v3064_v53 = vpop.eup %3063 }
 0x4a8   : > { %v1203_v54 = vsel %vm985_vm3, %v3064_v53, 0.0 }
 0x4b9   : > { %1204 = vadd.xlane.f32.xlu0 %v1203_v54 }
 0x509   : > { %v1184_v55 = vpop.xlane.xlu0 %1183 }
 0x50a   : > { %v1192_v56 = vsub.f32 %v1075_v35, %v1184_v55 }
 0x50c   : > { %v1197_v57 = vmul.f32 1.442695, %v1192_v56 }
 0x50d   : > { %v1187_v58 = vpop.xlane.xlu0 %1186 }
 0x50e   : > { %3065 = vpow2.f32 %v1197_v57  ;;  %v1193_v59 = vsub.f32 %v1124_v40, %v1187_v58 }
 0x510   : > { %v1199_v60 = vmul.f32 1.442695, %v1193_v59 }
 0x511   : > { %v1439_v61 = vpop.permute.xlu0 %1438  ;;  %v1190_v62 = vpop.xlane.xlu1 %1189 }
 0x512   : > { %3067 = vpow2.f32 %v1199_v60  ;;  %v1194_v63 = vsub.f32 %v1173_v45, %v1190_v62  ;;  %v4461_v17 = vpack.c.bf16 %v1439_v61, %v1439_v61 }
 0x514   : > { %v1201_v0 = vmul.f32 1.442695, %v1194_v63 }
 0x515   : > { %v1277_v1 = vpop.permute.xlu0 %1276  ;;  %v1442_v2 = vpop.permute.xlu1 %1441 }
 0x516   : > { %3069 = vpow2.f32 %v1201_v0  ;;  %v1282_v4 = vsel %vm1232_vm4, %v1277_v1, 0  ;;  %v4475_v20 = vpack.c.bf16 %v1442_v2, %v1442_v2 }
 0x517   : > { %2756 = vmatpush3.bf16.msra.mxu0 %v1282_v4 }
 0x518   : > { %v3066_v7 = vpop.eup %3065  ;;  %2767 = vmatprep.subr.bf16.mxu0 %v3658_v3 }
 0x519   : > { %v1445_v8 = vpop.permute.xlu1 %1444  ;;  %v1206_v9 = vsel %vm985_vm3, %v3066_v7, 0.0 }
 0x51a   : > { %1207 = vadd.xlane.f32.xlu1 %v1206_v9  ;;  %v4465_v18 = vpack.c.bf16 %v1445_v8, %v1445_v8 }
 0x51c   : > { %v3068_v10 = vpop.eup %3067 }
 0x51d   : > { %v1228_v11 = vpop.permute.xlu1 %1227  ;;  %v1209_v12 = vsel %vm985_vm3, %v3068_v10, 0.0 }
 0x51e   : > { %v1234_v14 = vsel %vm1232_vm4, %v1228_v11, 0  ;;  %1210 = vadd.xlane.f32.xlu0 %v1209_v12 }
 0x51f   : > { %2750 = vmatpush3.bf16.msra.mxu1 %v1234_v14 }
 0x520   : > { %v3070_v15 = vpop.eup %3069  ;;  %2761 = vmatprep.subr.bf16.mxu1 %v3658_v3 }
 0x521   : > { %v1212_v16 = vsel %vm985_vm3, %v3070_v15, 0.0  ;;  %v1325_v24 = vpop.permute.xlu1 %1324 }
 0x522   : > { %1213 = vadd.xlane.f32.xlu0 %v1212_v16  ;;  %v1330_v26 = vsel %vm1232_vm4, %v1325_v24, 0 }
 0x52b   : > { %1372 = vrot.lane.b32.xlu1 %v4410_v21, %s3664_s11 }
 0x52f   : > { %1501 = vrot.lane.b32.xlu1 %v4461_v17, %s3663_s19 }
 0x533   : > { %1599 = vrot.lane.b32.xlu1 %v4465_v18, %s3663_s19 }
 0x538   : > { %1452 = vrot.lane.b32.xlu0 %v4471_v19, %s3663_s19 }
 0x53c   : > { %1550 = vrot.lane.b32.xlu0 %v4475_v20, %s3663_s19 }
 0x546   : > { %v1205_v21 = vpop.xlane.xlu0 %1204 }
 0x547   : > { %3071 = vrcp.f32 %v1205_v21 }
 0x551   : > { %v3072_v22 = vpop.eup %3071 }
 0x552   : > { %v1219_v23 = vmul.f32 %v3072_v22, %v3064_v53 }
 0x554   : > { %v1223_v25 = vpack.c.bf16 %v1219_v23, %v1219_v23 }
 0x556   : > { %2752 = vmatmul.mubr.msk.bf16.vlgmr.msra.gmra.mrb[4].mxu1 %vm985_vm3, %v1223_v25 }
 0x557   : > { %2762 = vmatpush3.bf16.msra.mxu1 %v1330_v26  ;;  %2763 = vmatprep.mubr.msk.bf16.mxu1 %vm3659_vm1, %v3658_v3 }
 0x558   : > { %2773 = vmatprep.subr.bf16.mxu1 %v3658_v3 }
 0x5a7   : > { %v1208_v13 = vpop.xlane.xlu1 %1207 }
 0x5a8   : > { %3073 = vrcp.f32 %v1208_v13 }
 0x5ab   : > { %v1211_v27 = vpop.xlane.xlu0 %1210  ;;  %v1373_v31 = vpop.permute.xlu1 %1372 }
 0x5ac   : > { %3075 = vrcp.f32 %v1211_v27  ;;  %v1378_v35 = vsel %vm1232_vm4, %v1373_v31, 0 }
 0x5af   : > { %v1214_v28 = vpop.xlane.xlu0 %1213  ;;  %v1502_v41 = vpop.permute.xlu1 %1501 }
 0x5b0   : > { %3077 = vrcp.f32 %v1214_v28  ;;  %v1507_v43 = vsel %vm985_vm3, %v1502_v41, 0 }
 0x5b2   : > { %v3074_v29 = vpop.eup %3073 }
 0x5b3   : > { %v1220_v30 = vmul.f32 %v3074_v29, %v3066_v7  ;;  %v1453_v36 = vpop.permute.xlu0 %1452  ;;  %v1600_v46 = vpop.permute.xlu1 %1599 }
 0x5b4   : > { %v1458_v40 = vsel %vm985_vm3, %v1453_v36, 0  ;;  %v1605_v47 = vsel %vm985_vm3, %v1600_v46, 0 }
 0x5b5   : > { %v1224_v32 = vpack.c.bf16 %v1220_v30, %v1220_v30 }
 0x5b6   : > { %v3076_v33 = vpop.eup %3075 }
 0x5b7   : > { %v1221_v34 = vmul.f32 %v3076_v33, %v3068_v10  ;;  %2758 = vmatmul.mubr.msk.bf16.vlgmr.msra.gmra.mrb[16].mxu0 %vm985_vm3, %v1224_v32  ;;  %v1551_v44 = vpop.permute.xlu0 %1550 }
 0x5b8   : > { %2768 = vmatpush3.bf16.msra.mxu0 %v1378_v35  ;;  %2769 = vmatprep.mubr.msk.bf16.mxu0 %vm3659_vm1, %v3658_v3  ;;  %v1556_v45 = vsel %vm985_vm3, %v1551_v44, 0 }
 0x5b9   : > { %v1225_v37 = vpack.c.bf16 %v1221_v34, %v1221_v34  ;;  %2779 = vmatprep.subr.bf16.mxu0 %v3658_v3 }
 0x5ba   : > { %v3078_v38 = vpop.eup %3077 }
 0x5bb   : > { %v1222_v39 = vmul.f32 %v3078_v38, %v3070_v15  ;;  %2764 = vmatmul.mubr.msk.bf16.vlgmr.msra.gmra.mrb[8].mxu1 %vm985_vm3, %v1225_v37 }
 0x5bc   : > { %2774 = vmatpush3.bf16.xpose.msra.mxu1 %v1458_v40  ;;  %2775 = vmatprep.mubr.msk.bf16.mxu1 %vm3659_vm1, %v3658_v3 }
 0x5bd   : > { %v1226_v42 = vpack.c.bf16 %v1222_v39, %v1222_v39  ;;  %2785 = vmatprep.subr.bf16.mxu1 %v3658_v3 }
 0x5bf   : > { %2770 = vmatmul.mubr.msk.bf16.vlgmr.msra.gmra.mrb[20].mxu0 %vm985_vm3, %v1226_v42 }
 0x5c0   : > { %2781 = vmatprep.mubr.msk.bf16.mxu0 %vm3659_vm1, %v3658_v3 }
 0x5c1   : > { %2780 = vmatpush3.bf16.xpose.msra.mxu0 %v1507_v43 }
 0x5c2   : > { %2791 = vmatprep.subr.bf16.mxu0 %v3658_v3 }
 0x5c3   : > { %2776 = vmatmul.mubr.msk.bf16.vlgmr.msra.gmra.mrb[12].mxu1 %vm985_vm3, %v4471_v19 }
 0x5c4   : > { %2786 = vmatpush3.bf16.xpose.msra.mxu1 %v1556_v45  ;;  %2787 = vmatprep.mubr.msk.bf16.mxu1 %vm3659_vm1, %v3658_v3 }
 0x5c5   : > { %2797 = vmatprep.subr.bf16.mxu1 %v3658_v3 }
 0x5c8   : > { %2782 = vmatmul.mubr.msk.bf16.vlgmr.msra.gmra.mrb[24].mxu0 %vm985_vm3, %v4461_v17 }
 0x5c9   : > { %2792 = vmatpush3.bf16.xpose.msra.mxu0 %v1605_v47  ;;  %2793 = vmatprep.mubr.msk.bf16.mxu0 %vm3659_vm1, %v3658_v3 }
 0x5ca   : > { %2803 = vmatprep.subr.bf16.mxu0 %v3658_v3 }
 0x5cb   : > { %2788 = vmatmul.mubr.msk.bf16.vlgmr.msra.gmra.mrb[16].mxu1 %vm985_vm3, %v4475_v20 }
 0x5cc   : > { %2799 = vmatprep.mubr.msk.bf16.mxu1 %vm3659_vm1, %v3658_v3 }
 0x5d0   : > { %2794 = vmatmul.mubr.msk.bf16.vlgmr.msra.gmra.mrb[28].mxu0 %vm985_vm3, %v4465_v18 }
 0x5d1   : > { %2805 = vmatprep.mubr.msk.bf16.mxu0 %vm3659_vm1, %v3658_v3 }
 0x629   : > { %v4519_v48 = vpop.f32.mrb[4].mxu1 }
 0x62a   : > { %v2753_v49 = vpop.f32.mrb[5].mxu1 }
 0x62b   : > { %v1273_v50 = vpop.f32.mrb[6].mxu1 }
 0x62c   : > { %v2754_v51 = vpop.f32.mrb[7].mxu1 }
 0x68a   : > { %v4521_v52 = vpop.f32.mrb[16].mxu0 }
 0x68b   : > { %v2759_v53 = vpop.f32.mrb[17].mxu0 }
 0x68c   : > { %v1321_v54 = vpop.f32.mrb[18].mxu0 }
 0x68d   : > { %v2760_v55 = vpop.f32.mrb[19].mxu0 }
 0x68e   : > { %v4523_v56 = vpop.f32.mrb[8].mxu1 }
 0x68f   : > { %v2765_v57 = vpop.f32.mrb[9].mxu1 }
 0x690   : > { %v1369_v58 = vpop.f32.mrb[10].mxu1 }
 0x691   : > { %v2766_v59 = vpop.f32.mrb[11].mxu1 }
 0x692   : > { %v4525_v60 = vpop.f32.mrb[20].mxu0 }
 0x693   : > { %v2771_v61 = vpop.f32.mrb[21].mxu0 }
 0x694   : > { %v1417_v62 = vpop.f32.mrb[22].mxu0 }
 0x695   : > { %v2772_v63 = vpop.f32.mrb[23].mxu0 }
 0x696   : > { %v1494_v0 = vpop.f32.mrb[12].mxu1 }
 0x697   : > { %v2777_v1 = vpop.f32.mrb[13].mxu1  ;;  %v1647_v2 = vsel %vm985_vm3, %v1494_v0, -inf }
 0x698   : > { %1648 = vmax.xlane.f32.xlu0 %v1647_v2  ;;  %v1497_v4 = vpop.f32.mrb[14].mxu1 }
 0x699   : > { %v2778_v7 = vpop.f32.mrb[15].mxu1 }
 0x69b   : > { %v1543_v8 = vpop.f32.mrb[24].mxu0 }
 0x69c   : > { %v2783_v9 = vpop.f32.mrb[25].mxu0  ;;  %v1650_v10 = vsel %vm985_vm3, %v1543_v8, -inf }
 0x69d   : > { %1651 = vmax.xlane.f32.xlu1 %v1650_v10  ;;  %v1546_v11 = vpop.f32.mrb[26].mxu0 }
 0x69e   : > { %v2784_v12 = vpop.f32.mrb[27].mxu0  ;;  %v1592_v14 = vpop.f32.mrb[16].mxu1  ;;  %v3051_v11 = vld [vmem:[%s716_s0] sm:$0xff]  }
 0x69f   : > { %v2789_v15 = vpop.f32.mrb[17].mxu1  ;;  %v1653_v16 = vsel %vm985_vm3, %v1592_v14, -inf }
 0x6a0   : > { %1654 = vmax.xlane.f32.xlu0 %v1653_v16  ;;  %v1595_v21 = vpop.f32.mrb[18].mxu1  ;;  %v3052_v16 = vld [vmem:[%s716_s0 + $0x8] sm:$0xff]   ;;  %s3667_s0 = smov 24  }
 0x6a1   : > { %v2790_v22 = vpop.f32.mrb[19].mxu1 }
 0x6a3   : > { %v1641_v23 = vpop.f32.mrb[28].mxu0 }
 0x6a4   : > { %v2795_v24 = vpop.f32.mrb[29].mxu0  ;;  %v1656_v25 = vsel %vm985_vm3, %v1641_v23, -inf }
 0x6a5   : > { %1657 = vmax.xlane.f32.xlu0 %v1656_v25  ;;  %v1644_v26 = vpop.f32.mrb[30].mxu0 }
 0x6a6   : > { %v2796_v13 = vpop.f32.mrb[31].mxu0 }
 0x6ae   : > { %1695 = vrot.lane.b32.xlu1 %v4471_v19, %s3664_s11 }
 0x725   : > { %v1649_v27 = vpop.xlane.xlu0 %1648 }
 0x726   : > { %v1659_v28 = vsub.f32 %v1494_v0, %v1649_v27 }
 0x728   : > { %v1663_v29 = vmul.f32 1.442695, %v1659_v28 }
 0x72a   : > { %3079 = vpow2.f32 %v1663_v29  ;;  %v1652_v30 = vpop.xlane.xlu1 %1651 }
 0x72b   : > { %v1660_v31 = vsub.f32 %v1543_v8, %v1652_v30 }
 0x72d   : > { %v1665_v32 = vmul.f32 1.442695, %v1660_v31  ;;  %v1655_v33 = vpop.xlane.xlu0 %1654 }
 0x72e   : > { %v1661_v34 = vsub.f32 %v1592_v14, %v1655_v33  ;;  %v1696_v35 = vpop.permute.xlu1 %1695 }
 0x72f   : > { %3081 = vpow2.f32 %v1665_v32  ;;  %v1701_v36 = vsel %vm1232_vm4, %v1696_v35, 0 }
 0x730   : > { %v1667_v37 = vmul.f32 1.442695, %v1661_v34  ;;  %2798 = vmatpush3.bf16.msra.mxu1 %v1701_v36 }
 0x731   : > { %2809 = vmatprep.subr.bf16.mxu1 %v3658_v3 }
 0x732   : > { %3083 = vpow2.f32 %v1667_v37  ;;  %v1658_v38 = vpop.xlane.xlu0 %1657 }
 0x733   : > { %v1662_v19 = vsub.f32 %v1641_v23, %v1658_v38 }
 0x734   : > { %v3080_v39 = vpop.eup %3079 }
 0x735   : > { %v1669_v40 = vmul.f32 1.442695, %v1662_v19  ;;  %v1671_v41 = vsel %vm985_vm3, %v3080_v39, 0.0 }
 0x736   : > { %1672 = vadd.xlane.f32.xlu1 %v1671_v41 }
 0x737   : > { %3085 = vpow2.f32 %v1669_v40 }
 0x739   : > { %v3082_v42 = vpop.eup %3081 }
 0x73a   : > { %v1674_v43 = vsel %vm985_vm3, %v3082_v42, 0.0 }
 0x73b   : > { %1675 = vadd.xlane.f32.xlu0 %v1674_v43 }
 0x73c   : > { %v3084_v44 = vpop.eup %3083 }
 0x73d   : > { %v1677_v45 = vsel %vm985_vm3, %v3084_v44, 0.0 }
 0x73e   : > { %1678 = vadd.xlane.f32.xlu1 %v1677_v45 }
 0x741   : > { %v3086_v46 = vpop.eup %3085 }
 0x742   : > { %v1680_v47 = vsel %vm985_vm3, %v3086_v46, 0.0 }
 0x743   : > { %1681 = vadd.xlane.f32.xlu0 %v1680_v47  ;;  %v2635_v47 = vld [vmem:[%s724_s15] ss:$0 sm:$0xff]  ;;  %s2666_s15 = sshll.u32 %s4829_s10, 8 }
 0x74f   : > { %1791 = vrot.lane.b32.xlu1 %v4475_v20, %s3664_s11 }
 0x753   : > { %1839 = vrot.lane.b32.xlu1 %v4465_v18, %s3664_s11 }
 0x759   : > { %1743 = vrot.lane.b32.xlu0 %v4461_v17, %s3664_s11 }
 0x7c3   : > { %v1673_v49 = vpop.xlane.xlu1 %1672 }
 0x7c4   : > { %3087 = vrcp.f32 %v1673_v49 }
 0x7c8   : > { %v1676_v50 = vpop.xlane.xlu0 %1675 }
 0x7c9   : > { %3089 = vrcp.f32 %v1676_v50 }
 0x7cb   : > { %v1679_v51 = vpop.xlane.xlu1 %1678 }
 0x7cc   : > { %3091 = vrcp.f32 %v1679_v51 }
 0x7ce   : > { %v3088_v53 = vpop.eup %3087 }
 0x7cf   : > { %v1687_v54 = vmul.f32 %v3088_v53, %v3080_v39  ;;  %v1792_v55 = vpop.permute.xlu1 %1791 }
 0x7d0   : > { %v1682_v57 = vpop.xlane.xlu0 %1681  ;;  %v1797_v20 = vsel %vm1232_vm4, %v1792_v55, 0 }
 0x7d1   : > { %3093 = vrcp.f32 %v1682_v57  ;;  %v1691_v58 = vpack.c.bf16 %v1687_v54, %v1687_v54 }
 0x7d3   : > { %v3090_v59 = vpop.eup %3089  ;;  %2800 = vmatmul.mubr.msk.bf16.vlgmr.msra.gmra.mrb[20].mxu1 %vm985_vm3, %v1691_v58  ;;  %v1840_v63 = vpop.permute.xlu1 %1839 }
 0x7d4   : > { %v1688_v18 = vmul.f32 %v3090_v59, %v3082_v42  ;;  %2810 = vmatpush3.bf16.msra.mxu1 %v1797_v20  ;;  %v1744_v17 = vpop.permute.xlu0 %1743  ;;  %2811 = vmatprep.mubr.msk.bf16.mxu1 %vm3659_vm1, %v3658_v3  ;;  %v1845_v2 = vsel %vm1232_vm4, %v1840_v63, 0 }
 0x7d5   : > { %v1749_v61 = vsel %vm1232_vm4, %v1744_v17, 0  ;;  %2821 = vmatprep.subr.bf16.mxu1 %v3658_v3 }
 0x7d6   : > { %v3092_v62 = vpop.eup %3091  ;;  %2804 = vmatpush3.bf16.msra.mxu0 %v1749_v61  ;;  %v1692_v0 = vpack.c.bf16 %v1688_v18, %v1688_v18 }
 0x7d7   : > { %v1689_v1 = vmul.f32 %v3092_v62, %v3084_v44  ;;  %2815 = vmatprep.subr.bf16.mxu0 %v3658_v3 }
 0x7d9   : > { %2806 = vmatmul.mubr.msk.bf16.vlgmr.msra.gmra.mrb[32].mxu0 %vm985_vm3, %v1692_v0  ;;  %v1693_v4 = vpack.c.bf16 %v1689_v1, %v1689_v1 }
 0x7da   : > { %2816 = vmatpush3.bf16.msra.mxu0 %v1845_v2  ;;  %2817 = vmatprep.mubr.msk.bf16.mxu0 %vm3659_vm1, %v3658_v3  ;;  %v3053_v2 = vld [vmem:[%s749_s30] sm:$0xff]  }
 0x7db   : > { %v3094_v7 = vpop.eup %3093  ;;  %2812 = vmatmul.mubr.msk.bf16.vlgmr.msra.gmra.mrb[24].mxu1 %vm985_vm3, %v1693_v4  ;;  %2829 = vmatprep.subr.bf16.mxu0 %v3658_v3  ;;  %v3054_v4 = vld [vmem:[%s749_s30 + $0x8] sm:$0xff]  }
 0x7dc   : > { %v1690_v8 = vmul.f32 %v3094_v7, %v3086_v46  ;;  %2825 = vmatprep.mubr.msk.bf16.mxu1 %vm3659_vm1, %v3658_v3  ;;  %2822 = vmatpush3.bf16.msra.mxu1 %v3051_v11  ;;  %v3055_v7 = vld [vmem:[%s4352_s21] sm:$0xff]  }
 0x7dd   : > { %2823 = vmatprep.subr.bf16.mxu1 %v3658_v3  ;;  %v3059_v11 = vld [vmem:[%s4352_s21 + $0x20] sm:$0xff]  }
 0x7de   : > { %v1694_v9 = vpack.c.bf16 %v1690_v8, %v1690_v8  ;;  %v3056_v8 = vld [vmem:[%s4352_s21 + $0x8] sm:$0xff]  }
 0x7e0   : > { %2824 = vmatpush3.bf16.msra.mxu1 %v3052_v16 }
 0x7e1   : > { %2818 = vmatmul.mubr.msk.bf16.vlgmr.msra.gmra.mrb[36].mxu0 %vm985_vm3, %v1694_v9  ;;  %2837 = vmatprep.subr.bf16.mxu1 %v3658_v3  ;;  %v3057_v9 = vld [vmem:[%s4352_s21 + $0x10] sm:$0xff]  }
 0x7e2   : > { %2833 = vmatprep.mubr.msk.bf16.mxu0 %vm3659_vm1, %v3658_v3  ;;  %2830 = vmatpush3.bf16.msra.mxu0 %v3053_v2 }
 0x7e3   : > { %2831 = vmatprep.subr.bf16.mxu0 %v3658_v3 }
 0x7e6   : > { %2832 = vmatpush3.bf16.msra.mxu0 %v3054_v4  ;;  %v2654_v4 = vld [vmem:[%s782_s9] ss:$0 sm:$0xff]  ;;  %s3497_s9 = sshll.u32 %s3668_s12, 4  ;;  %s3498_s9 = int_to_ptr.vmem [resolvable:$false] %s3497_s9 }
 0x8a6   : > { %v1737_v10 = vpop.f32.mrb[20].mxu1 }
 0x8a7   : > { %v2801_v12 = vpop.f32.mrb[21].mxu1 }
 0x8a8   : > { %v1740_v14 = vpop.f32.mrb[22].mxu1  ;;  %v3060_v12 = vld [vmem:[%s4352_s21 + $0x28] sm:$0xff]  }
 0x8a9   : > { %v2802_v15 = vpop.f32.mrb[23].mxu1 }
 0x8ac   : > { %v1785_v21 = vpop.f32.mrb[32].mxu0 }
 0x8ad   : > { %v3034_v22 = vpack.i.bf16 %v1785_v21, %v4521_v52  ;;  %v2807_v23 = vpop.f32.mrb[33].mxu0 }
 0x8ae   : > { %v1788_v24 = vpop.f32.mrb[34].mxu0  ;;  %v1833_v25 = vpop.f32.mrb[24].mxu1 }
 0x8af   : > { %v3039_v26 = vpack.i.bf16 %v1833_v25, %v4523_v56  ;;  %3035 = vrot.lane.b32.xlu0 %v3034_v22, %s3665_s25  ;;  %v2808_v13 = vpop.f32.mrb[35].mxu0  ;;  %v2813_v27 = vpop.f32.mrb[25].mxu1  ;;  %v2639_v25 = vld [vmem:[%s732_s16] ss:$0 sm:$0xff]  ;;  %s2262_s16 = sshll.u32 %s4368_s3, 4  ;;  %s4633_s16 = int_to_ptr.vmem [resolvable:$true] %s2262_s16 }
 0x8b0   : > { %v1836_v28 = vpop.f32.mrb[26].mxu1  ;;  %p3500_p10 = scmp.lt.s32.totalorder %s4633_s16, %s3498_s9 }
 0x8b1   : > { %3040 = vrot.lane.b32.xlu1 %v3039_v26, %s3666_s7  ;;  %v2814_v29 = vpop.f32.mrb[27].mxu1 }
 0x8b2   : > { %v2640_v29 = vld [vmem:[%s740_s14] ss:$0 sm:$0xff] }
 0x8b4   : > { %v1881_v30 = vpop.f32.mrb[36].mxu0 }
 0x8b5   : > { %v3044_v31 = vpack.i.bf16 %v1881_v30, %v4525_v60  ;;  %v2819_v52 = vpop.f32.mrb[37].mxu0 }
 0x8b6   : > { %v1884_v32 = vpop.f32.mrb[38].mxu0 }
 0x8b7   : > { %3045 = vrot.lane.b32.xlu0 %v3044_v31, %s3667_s0  ;;  %v2820_v33 = vpop.f32.mrb[39].mxu0 }
 0x8b8   : > { %v3061_v33 = vld [vmem:[%s4352_s21 + $0x30] sm:$0xff]  }
 0x921   : > { %v3036_v34 = vpop.permute.xlu0 %3035 }
 0x922   : > { %v3038_v56 = vunpack.i.h.bf16 %v3036_v34  ;;  %v3037_v36 = vunpack.i.l.bf16 %v3036_v34  ;;  %v3062_v34 = vld [vmem:[%s4352_s21 + $0x38] sm:$0xff]  }
 0x923   : > { %v3041_v35 = vpop.permute.xlu1 %3040 }
 0x924   : > { %v3043_v37 = vunpack.i.h.bf16 %v3041_v35  ;;  %v3042_v38 = vunpack.i.l.bf16 %v3041_v35  ;;  %v1899_v39 = vsel %vm985_vm3, %v1737_v10, %v3038_v56  ;;  %v1432_v60 = vsel %vm985_vm3, %v4519_v48, %v3037_v36  ;;  %v3058_v10 = vld [vmem:[%s4352_s21 + $0x18] sm:$0xff]   ;;  %v2641_v35 = vld [vmem:[%s757_s17] ss:$0 sm:$0xff]  ;;  %s4830_s17 = sld [smem:[#allocation58_spill]] }
 0x926   : > { %v1434_v42 = vsel %vm1433_vm5, %v1432_v60, %v3042_v38  ;;  %v1900_v43 = vsel %vm1433_vm5, %v1899_v39, %v3043_v37 }
 0x929   : > { %v3046_v19 = vpop.permute.xlu0 %3045 }
 0x92a   : > { %v3048_v40 = vunpack.i.h.bf16 %v3046_v19  ;;  %v3047_v41 = vunpack.i.l.bf16 %v3046_v19  ;;  %s4831_s21 = smov %s4830_s17  ;;  %s4629_s26 = scalar_lea.hbm %s4830_s17, %s2666_s15 }
 0x92c   : > { %v1901_v44 = vsel %vm1435_vm6, %v1900_v43, %v3048_v40  ;;  %v1436_v45 = vsel %vm1435_vm6, %v1434_v42, %v3047_v41  ;;  %v2645_v42 = vld [vmem:[%s774_s2] ss:$0 sm:$0xff]  ;;  %s3493_s2 = scalar_lea.vmem %s4633_s16, 256 }
 0x92d   : > { %v1902_v46 = vpack.c.bf16 %v1901_v44, %v1436_v45  ;;  %p3494_p13 = scmp.ne.s32.totalorder %s4633_s16, %s3493_s2 }
 0x92f   : > { %2826 = vmatmul.mubr.msk.bf16.vlgmr.msra.gmra.mrb[28].mxu1 %vm923_vm2, %v1902_v46  ;;  %p3495_p1 = pnand %p3494_p13, %p4832_p12 }
 0x930   : > { %2853 = vmatprep.mubr.msk.bf16.mxu1 %vm3659_vm1, %v3658_v3  ;;  %2838 = vmatpush3.bf16.msra.mxu1 %v3055_v7 }
 0x931   : > { %2839 = vmatprep.subr.bf16.mxu1 %v3658_v3  ;;  %p3496_p8 = pneg %p3495_p1 }
 0x934   : > { %2840 = vmatpush3.bf16.msra.mxu1 %v3056_v8 }
 0x935   : > { %2841 = vmatprep.subr.bf16.mxu1 %v3658_v3 }
 0x938   : > { %2842 = vmatpush3.bf16.msra.mxu1 %v3057_v9  ;;  %v2655_v9 = vld [vmem:[%s790_s24] ss:$0 sm:$0xff]  ;;  %s3499_s24 = scalar_lea.vmem %s3498_s9, 512 }
 0x939   : > { %2843 = vmatprep.subr.bf16.mxu1 %v3658_v3  ;;  %p3501_p3 = scmp.lt.s32.totalorder %s3499_s24, %s3493_s2 }
 0x93b   : > { %p3502_p2 = por %p3501_p3, %p3500_p10 }
 0x93c   : > { %2844 = vmatpush3.bf16.msra.mxu1 %v3058_v10 }
 0x93d   : > { %2845 = vmatprep.subr.bf16.mxu1 %v3658_v3  ;;  %p3503_p7 = pnand %p3502_p2, %p3496_p8 }
 0x940   : > { %2846 = vmatpush3.bf16.msra.mxu1 %v3059_v11 }
 0x941   : > { %2847 = vmatprep.subr.bf16.mxu1 %v3658_v3 }
 0x944   : > { %2848 = vmatpush3.bf16.msra.mxu1 %v3060_v12 }
 0x945   : > { %2849 = vmatprep.subr.bf16.mxu1 %v3658_v3 }
 0x948   : > { %2850 = vmatpush3.bf16.msra.mxu1 %v3061_v33 }
 0x949   : > { %2851 = vmatprep.subr.bf16.mxu1 %v3658_v3 }
 0x94c   : > { %2852 = vmatpush3.bf16.msra.mxu1 %v3062_v34 }
 0xa02   : > { %v1963_v49 = vpop.f32.mrb[28].mxu1 }
 0xa03   : > { %v1964_v50 = vadd.f32 %v2635_v47, %v1963_v49  ;;  %v2827_v51 = vpop.f32.mrb[29].mxu1 }
 0xa04   : > { %v1966_v53 = vpop.f32.mrb[30].mxu1 }
 0xa05   : > { %v1967_v54 = vadd.f32 %v2635_v47, %v1966_v53  ;;  %v2828_v48 = vpop.f32.mrb[31].mxu1  ;;  %v1970_v55 = vadd.f32 %v1964_v50, %v4384_v5 }
 0xa07   : > { %v1974_v57 = vsel %vm923_vm2, %v1970_v55, 0.0  ;;  %v1971_v58 = vadd.f32 %v1967_v54, %v4387_v6 }
 0xa08   : > { %1975 = vadd.xlane.f32.xlu1 %v1974_v57 }
 0xa09   : > { %v1977_v59 = vsel %vm923_vm2, %v1971_v58, 0.0 }
 0xa0a   : > { %1978 = vadd.xlane.f32.xlu0 %v1977_v59 }
 0xa95   : > { %v1976_v20 = vpop.xlane.xlu1 %1975 }
 0xa96   : > { %v1981_v18 = vmul.f32 0.03125, %v1976_v20 }
 0xa97   : > { %v1979_v17 = vpop.xlane.xlu0 %1978 }
 0xa98   : > { %v1983_v61 = vsub.f32 %v1970_v55, %v1981_v18  ;;  %v1982_v62 = vmul.f32 0.03125, %v1979_v17 }
 0xa9a   : > { %v1984_v63 = vsub.f32 %v1971_v58, %v1982_v62  ;;  %v1985_v0 = vmul.f32 %v1983_v61, %v1983_v61 }
 0xa9c   : > { %v1987_v5 = vsel %vm923_vm2, %v1985_v0, 0.0  ;;  %v1986_v1 = vmul.f32 %v1984_v63, %v1984_v63 }
 0xa9d   : > { %1988 = vadd.xlane.f32.xlu0 %v1987_v5 }
 0xa9e   : > { %v1990_v6 = vsel %vm923_vm2, %v1986_v1, 0.0 }
 0xa9f   : > { %1991 = vadd.xlane.f32.xlu1 %v1990_v6 }
 0xb2a   : > { %v1989_v14 = vpop.xlane.xlu0 %1988 }
 0xb2b   : > { %v1993_v15 = vmul.f32 0.03125, %v1989_v14 }
 0xb2c   : > { %v1992_v16 = vpop.xlane.xlu1 %1991 }
 0xb2d   : > { %v1995_v21 = vadd.f32 1e-05, %v1993_v15  ;;  %v1994_v22 = vmul.f32 0.03125, %v1992_v16 }
 0xb2f   : > { %3095 = vrsqrt.f32 %v1995_v21  ;;  %v1996_v23 = vadd.f32 1e-05, %v1994_v22 }
 0xb31   : > { %3097 = vrsqrt.f32 %v1996_v23 }
 0xb39   : > { %v3096_v24 = vpop.eup %3095 }
 0xb3a   : > { %v1999_v26 = vmul.f32 %v3096_v24, %v1983_v61 }
 0xb3b   : > { %v3098_v13 = vpop.eup %3097 }
 0xb3c   : > { %v2007_v27 = vmul.f32 %v2639_v25, %v1999_v26  ;;  %v2000_v28 = vmul.f32 %v3098_v13, %v1984_v63 }
 0xb3e   : > { %v2008_v30 = vmul.f32 %v2639_v25, %v2000_v28  ;;  %v2015_v31 = vadd.f32 %v2640_v29, %v2007_v27 }
 0xb40   : > { %v2016_v52 = vadd.f32 %v2640_v29, %v2008_v30 }
 0xb42   : > { %v2017_v32 = vpack.c.bf16 %v2016_v52, %v2015_v31 }
 0xb44   : > { %2834 = vmatmul.mubr.msk.bf16.vlgmr.msra.gmra.mrb[40].mxu0 %vm923_vm2, %v2017_v32 }
 0xc17   : > { %v2078_v56 = vpop.f32.mrb[40].mxu0 }
 0xc18   : > { %v2079_v36 = vadd.f32 %v2641_v35, %v2078_v56  ;;  %v2835_v37 = vpop.f32.mrb[41].mxu0 }
 0xc19   : > { %v2081_v38 = vpop.f32.mrb[42].mxu0 }
 0xc1a   : > { %v2082_v19 = vadd.f32 %v2641_v35, %v2081_v38  ;;  %v2836_v39 = vpop.f32.mrb[43].mxu0  ;;  %v2085_v60 = vmax.f32 %v2079_v36, 0.0 }
 0xc1c   : > { %v2086_v40 = vmax.f32 %v2082_v19, 0.0 }
 0xc1e   : > { %v2087_v41 = vpack.c.bf16 %v2086_v40, %v2085_v60 }
 0xc20   : > { %2854 = vmatmul.mubr.bf16.vlgmr.msra.gmra.mrb[32].mxu1 %v2087_v41 }
 0xcf3   : > { %v2193_v43 = vpop.f32.mrb[32].mxu1 }
 0xcf4   : > { %v2194_v44 = vadd.f32 %v2645_v42, %v2193_v43  ;;  %v2855_v45 = vpop.f32.mrb[33].mxu1 }
 0xcf5   : > { %v2196_v3 = vpop.f32.mrb[34].mxu1 }
 0xcf6   : > { %v2197_v46 = vadd.f32 %v2645_v42, %v2196_v3  ;;  %v2856_v47 = vpop.f32.mrb[35].mxu1  ;;  %v2200_v49 = vadd.f32 %v2194_v44, %v2015_v31 }
 0xcf8   : > { %v2204_v50 = vsel %vm923_vm2, %v2200_v49, 0.0  ;;  %v2201_v51 = vadd.f32 %v2197_v46, %v2016_v52 }
 0xcf9   : > { %2205 = vadd.xlane.f32.xlu0 %v2204_v50 }
 0xcfa   : > { %v2207_v53 = vsel %vm923_vm2, %v2201_v51, 0.0 }
 0xcfb   : > { %2208 = vadd.xlane.f32.xlu1 %v2207_v53 }
 0xd86   : > { %v2206_v54 = vpop.xlane.xlu0 %2205 }
 0xd87   : > { %v2210_v48 = vmul.f32 0.03125, %v2206_v54 }
 0xd88   : > { %v2209_v55 = vpop.xlane.xlu1 %2208 }
 0xd89   : > { %v2212_v57 = vsub.f32 %v2200_v49, %v2210_v48  ;;  %v2211_v58 = vmul.f32 0.03125, %v2209_v55 }
 0xd8b   : > { %v2213_v59 = vsub.f32 %v2201_v51, %v2211_v58  ;;  %v2214_v20 = vmul.f32 %v2212_v57, %v2212_v57 }
 0xd8d   : > { %v2216_v18 = vsel %vm923_vm2, %v2214_v20, 0.0  ;;  %v2215_v17 = vmul.f32 %v2213_v59, %v2213_v59 }
 0xd8e   : > { %2217 = vadd.xlane.f32.xlu0 %v2216_v18 }
 0xd8f   : > { %v2219_v61 = vsel %vm923_vm2, %v2215_v17, 0.0 }
 0xd90   : > { %2220 = vadd.xlane.f32.xlu1 %v2219_v61 }
 0xe1b   : > { %v2218_v62 = vpop.xlane.xlu0 %2217 }
 0xe1c   : > { %v2222_v63 = vmul.f32 0.03125, %v2218_v62 }
 0xe1d   : > { %v2221_v0 = vpop.xlane.xlu1 %2220 }
 0xe1e   : > { %v2224_v5 = vadd.f32 1e-05, %v2222_v63  ;;  %v2223_v1 = vmul.f32 0.03125, %v2221_v0 }
 0xe20   : > { %3099 = vrsqrt.f32 %v2224_v5  ;;  %v2225_v6 = vadd.f32 1e-05, %v2223_v1 }
 0xe22   : > { %3101 = vrsqrt.f32 %v2225_v6 }
 0xe2a   : > { %v3100_v2 = vpop.eup %3099 }
 0xe2b   : > { %v2228_v7 = vmul.f32 %v3100_v2, %v2212_v57 }
 0xe2c   : > { %v3102_v8 = vpop.eup %3101 }
 0xe2d   : > { %v2236_v10 = vmul.f32 %v2654_v4, %v2228_v7  ;;  %v2229_v11 = vmul.f32 %v3102_v8, %v2213_v59 }
 0xe2f   : > { %v2244_v12 = vadd.f32 %v2655_v9, %v2236_v10  ;;  %v2237_v14 = vmul.f32 %v2654_v4, %v2229_v11 }
 0xe31   : > { %2246 = vst.msk [vmem:[%s4368_s3] sm:$0xff] %vm923_vm2, %v2244_v12  ;;  %v2245_v15 = vadd.f32 %v2655_v9, %v2237_v14 }
 0xe33   : > { %2247 = vst.msk [vmem:[%s4368_s3 + $0x8] sm:$0xff] %vm923_vm2, %v2245_v15 }
 0xe34   : > { %3506 = shalt.err (!%p3503_p7)
}
 0xe35   : > { %s3507_s3 = scalar_lea.hbm %s4629_s26, 256  ;;  %s3511_s1 = scalar_lea.hbm %s4831_s21, 512 }
 0xe36   : > { %p3508_p0 = scmp.ne.s32.totalorder %s4629_s26, %s3507_s3  ;;  %p3512_p6 = scmp.lt.u32.totalorder %s4629_s26, %s4831_s21 }
 0xe37   : > { %p3513_p9 = scmp.lt.u32.totalorder %s3511_s1, %s3507_s3  ;;  %p3515_p13 = scmp.lt.u32.totalorder %s3507_s3, %s4629_s26 }
 0xe38   : > { %p3509_p5 = pnand %p3508_p0, %p4832_p12 }
 0xe39   : > { %p3514_p4 = por %p3513_p9, %p3512_p6 }
 0xe3a   : > { %p3510_p11 = pneg %p3509_p5 }
 0xe3b   : > { %p3516_p1 = por %p3515_p13, %p3514_p4 }
 0xe3d   : > { %p3517_p8 = pnand %p3516_p1, %p3510_p11 }
 0xe3f   : > { %3520 = shalt.err (!%p3517_p8)
}
 0xe40   : > { %s3669_s11 = smov 128  }
 0xe41   : > { %2883 = dma.vmem_to_hbm [thread:$0]  (%p4832_p12), %s4633_s16, 256, %s4629_s26, %s2249_s27, %s3669_s11, %s3669_s11, %s3665_s25  }
 0xe42 PF: > { %s4833_s7 = sld [smem:[#allocation32_spill]]  ;;  %p2930_p10 = scmp.ge.s32.totalorder %s3639_s18, 2 }
 0xe43   : > { %s2277_s0 = sand.u32 1, %s3611_s28  }
 0xe44   : > { %s2278_s10 = scalar_lea.sflag [#allocation4], %s2277_s0 }
 0xe48   : > { %p4834_p3 = scmp.ne.s32.totalorder %s4833_s7, 0 }
 0xe4a   : > { %p2926_p2 = pnand %p2930_p10, %p4834_p3 }
 0xe4c   : > { %3594 = dma.done.wait (!%p2926_p2), %s2278_s10, 256  }
 0xe4d   : > { %3596 = vsyncadd (!%p2926_p2), %s2278_s10, 4294967040  ;;  %s47_s18 = sadd.s32 1, %s3639_s18   ;;  %s4835_s25 = sld [smem:[#allocation33_spill]] }
 0xe4e   : > { %p44_p7 = scmp.ge.s32.totalorder %s47_s18, 6   ;;  %s4836_s26 = sld [smem:[#allocation34_spill]] }
 0xe4f   : > { %s4837_s27 = sld [smem:[#allocation43_spill]]  ;;  %s4838_s5 = sld [smem:[#allocation35_spill]] }
 0xe50   : > { %s4839_s30 = sld [smem:[#allocation44_spill]]  ;;  %s4840_s14 = sld [smem:[#allocation38_spill]] }
 0xe51   : > { %s4841_s15 = sld [smem:[#allocation39_spill]]  ;;  %s4842_s16 = sld [smem:[#allocation41_spill]] }
 0xe52   : > { %s4843_s17 = sld [smem:[#allocation42_spill]]  ;;  %s4844_s28 = smov %s3615_s29 }
 0xe53   :  { %46 = sbr.rel (!%p44_p7) target bundleno = 36 (0x24), region = 265 }
 0xe55   : > { %s4845_s29 = smov %s4838_s5 }
 0xe5a   :  { %2283 = vsyncpa [#allocation3], 1 }
 0xe5b   :  { %2285 = vsyncpa [#allocation3 + $0x1], 1 }
 0xe5c   :  { %2286 = vsyncpa [#allocation6], 1 }
 0xe5d   :  { %2288 = vsyncpa [#allocation6 + $0x1], 1 }
 0xe5e   :  { %2289 = vsyncpa [#allocation9], 1 }
 0xe5f   :  { %2291 = vsyncpa [#allocation9 + $0x1], 1 }
 0xe60   :  { %2292 = vsyncpa [#allocation12], 1 }
 0xe61   :  { %2294 = vsyncpa [#allocation12 + $0x1], 1 }
 0xe62   :  { %2295 = vsyncpa [#allocation15], 1 }
 0xe63   :  { %2297 = vsyncpa [#allocation15 + $0x1], 1 }
 0xe64   :  { %2298 = vsyncpa [#allocation18], 1 }
 0xe65   :  { %2300 = vsyncpa [#allocation18 + $0x1], 1 }
 0xe66   :  { %2301 = vsyncpa [#allocation21], 1 }
 0xe67   :  { %2303 = vsyncpa [#allocation21 + $0x1], 1 }
 0xe68   :  { %2304 = vsyncpa [#allocation4], 1 }
 0xe69   :  { %2306 = vsyncpa [#allocation4 + $0x1], 1 }

</bundles_post_ra>
